<compile_context>
chip_gen: v7x
topology: tpu7x:2x2x1
jax: 0.10.0
libtpu: 0.0.40
codegen_flags: <defaults>
</compile_context>

<pallas_src>
import math

import jax
import jax.numpy as jnp
from jax.experimental import pallas as pl
from jax.experimental.pallas import tpu as pltpu

# ----- toy hyper-parameters (structurally identical to the module) -----
B = 2            # batch
L = 8            # sequence length
D = 32           # d_model
H = 4            # attention heads
DK = D // H      # per-head dim
DFF = 64         # feed-forward hidden dim
N_LAYERS = 2     # number of encoder layers
EPS = 1e-6

R = B * L        # rows processed per grid step (batch folded for row-wise ops)
NB = H * B       # attention batch = heads x sequences (per-sequence (L, L) scores)

MATMUL_DTYPE = jnp.bfloat16   # MXU-native on v5e/v6e/v7x; accumulation stays f32


# ---------------------------------------------------------------------------------
# In-kernel LayerNorm: exact reference semantics (unbiased std, divide by std + eps).
# Exact divide (not approx reciprocal) per the correctness feedback.
# ---------------------------------------------------------------------------------
def _layer_norm(x, scale, bias):
    mean = jnp.mean(x, axis=-1, keepdims=True)
    c = x - mean
    var = jnp.sum(c * c, axis=-1, keepdims=True) * (1.0 / (D - 1))
    return scale * (c / (jnp.sqrt(var) + EPS)) + bias


# ---------------------------------------------------------------------------------
# Pallas kernel: one grid step = one encoder layer over all R = B*L rows.
# The residual stream persists across layers in VMEM scratch; weights are streamed
# per layer by the BlockSpecs (double-buffered by the Pallas pipeline).
# ---------------------------------------------------------------------------------
def encoder_kernel(x_ref, amask_ref,
                   wqkv_ref, bqkv_ref, wo_ref, bo_ref,
                   w1_ref, b1_ref, w2_ref, b2_ref,
                   nscale_ref, nbias_ref, fscale_ref, fbias_ref,
                   o_ref, x_scr):
    layer = pl.program_id(0)
    inv_sqrt_dk = 1.0 / math.sqrt(DK)

    @pl.when(layer == 0)
    def _():
        x_scr[...] = x_ref[...]

    x = x_scr[...]                 # (R, D) f32 residual stream
    amask = amask_ref[...]         # (NB, L, L) additive mask, pre-broadcast in wrapper

    # ---- sublayer 1: x = x + SelfAttn(LayerNorm(x)) ------------------------------
    # NOTE: dropout inside the encoder layers is identity in eval mode.
    xn = _layer_norm(x, nscale_ref[0, 0], nbias_ref[0, 0])

    # Fused QKV projection: one (R, D) @ (D, 3D) bf16 MXU matmul + one f32 bias row.
    qkv = jnp.dot(xn.astype(MATMUL_DTYPE), wqkv_ref[0],
                  preferred_element_type=jnp.float32) + bqkv_ref[0]      # (R, 3*H*DK)

    # Head split: one reshape + one layout-aware transpose (no lane slicing / stack).
    qkv_h = pltpu.einshape("rhd->hrd", qkv.reshape(R, 3 * H, DK))        # (3H, R, DK)
    # Per-sequence attention batched over (head, sequence): n = h*B + b.
    q = qkv_h[0:H].reshape(NB, L, DK).astype(MATMUL_DTYPE)
    k = qkv_h[H:2 * H].reshape(NB, L, DK).astype(MATMUL_DTYPE)
    v = qkv_h[2 * H:3 * H].reshape(NB, L, DK).astype(MATMUL_DTYPE)

    scores = jnp.einsum('nqd,nkd->nqk', q, k,
                        preferred_element_type=jnp.float32) * inv_sqrt_dk + amask
    scores = scores - jnp.max(scores, axis=-1, keepdims=True)
    p = jnp.exp(scores)
    p = p * pl.reciprocal(jnp.sum(p, axis=-1, keepdims=True), approx=True)
    ctx = jnp.einsum('nqk,nkd->nqd', p.astype(MATMUL_DTYPE), v,
                     preferred_element_type=jnp.float32)                 # (NB, L, DK)

    # Output projection with the head reduction fused into the matmul accumulation:
    #   concat_h(ctx_h) @ Wo == sum_h ctx_h @ Wo_h    (Wo stored per head, bf16).
    # No (H, R, D) intermediate is materialized.
    attn = jnp.dot(ctx[0:B].reshape(R, DK).astype(MATMUL_DTYPE), wo_ref[0, 0],
                   preferred_element_type=jnp.float32)
    for h in range(1, H):
        attn = attn + jnp.dot(ctx[h * B:(h + 1) * B].reshape(R, DK).astype(MATMUL_DTYPE),
                              wo_ref[0, h], preferred_element_type=jnp.float32)
    x = x + attn + bo_ref[0]

    # ---- sublayer 2: x = x + FFN(LayerNorm(x)) ------------------------------------
    xn = _layer_norm(x, nscale_ref[0, 1], nbias_ref[0, 1])
    hdn = jnp.maximum(
        jnp.dot(xn.astype(MATMUL_DTYPE), w1_ref[0],
                preferred_element_type=jnp.float32) + b1_ref[0], 0.0)
    x = x + jnp.dot(hdn.astype(MATMUL_DTYPE), w2_ref[0],
                    preferred_element_type=jnp.float32) + b2_ref[0]

    x_scr[...] = x

    # ---- final LayerNorm (Encoder.norm) on the last layer step ---------------------
    @pl.when(layer == N_LAYERS - 1)
    def _():
        o_ref[...] = _layer_norm(x, fscale_ref[...], fbias_ref[...])


# ---------------------------------------------------------------------------------
# Wrapper
# ---------------------------------------------------------------------------------
def make_encoder_forward():
    def _const_spec(shape):
        nd = len(shape)
        return pl.BlockSpec(shape, lambda l, _nd=nd: (0,) * _nd)

    def _layer_spec(shape):
        # Streams one layer's slice per grid step (block index = layer id).
        nd = len(shape)
        return pl.BlockSpec((1,) + tuple(shape[1:]),
                            lambda l, _nd=nd: (l,) + (0,) * (_nd - 1))

    def fwd(x, mask, params):
        x2 = x.reshape(R, D)

        # Per-sequence additive mask, pre-broadcast over heads in the wrapper
        # (hoists the in-kernel broadcast; ordering n = h*B + b matches the kernel).
        amask = jnp.where(mask == 0.0, jnp.float32(-1e9), jnp.float32(0.0))   # (B, L, L)
        amask_nb = jnp.broadcast_to(amask[None], (H, B, L, L)).reshape(NB, L, L)

        cast = lambda w: w.astype(MATMUL_DTYPE)

        out2 = pl.pallas_call(
            encoder_kernel,
            out_shape=jax.ShapeDtypeStruct((R, D), jnp.float32),
            grid_spec=pltpu.PrefetchScalarGridSpec(
                num_scalar_prefetch=0,
                grid=(N_LAYERS,),
                in_specs=[
                    _const_spec((R, D)),                    # x (fetched once)
                    _const_spec((NB, L, L)),                # additive attention mask
                    _layer_spec((N_LAYERS, D, 3 * D)),      # fused QKV weights (bf16)
                    _layer_spec((N_LAYERS, 1, 3 * D)),      # fused QKV bias rows (f32)
                    _layer_spec((N_LAYERS, H, DK, D)),      # output proj per head (bf16)
                    _layer_spec((N_LAYERS, 1, D)),          # output proj bias rows
                    _layer_spec((N_LAYERS, D, DFF)),        # ffn w1 (bf16)
                    _layer_spec((N_LAYERS, 1, DFF)),        # ffn b1
                    _layer_spec((N_LAYERS, DFF, D)),        # ffn w2 (bf16)
                    _layer_spec((N_LAYERS, 1, D)),          # ffn b2
                    _layer_spec((N_LAYERS, 2, 1, D)),       # sublayer LN scales
                    _layer_spec((N_LAYERS, 2, 1, D)),       # sublayer LN biases
                    _const_spec((1, D)),                    # final LN scale
                    _const_spec((1, D)),                    # final LN bias
                ],
                out_specs=pl.BlockSpec((R, D), lambda l: (0, 0)),   # resident output
                scratch_shapes=[pltpu.VMEM((R, D), jnp.float32)],    # residual stream
            ),
            compiler_params=pltpu.CompilerParams(
                dimension_semantics=("arbitrary",),
                vmem_limit_bytes=32 * 1024 * 1024,
            ),
        )(x2, amask_nb,
          cast(params["wqkv"]), params["bqkv"], cast(params["wo"]), params["bo"],
          cast(params["w1"]), params["b1"], cast(params["w2"]), params["b2"],
          params["nscale"], params["nbias"], params["fscale"], params["fbias"])
        return out2.reshape(B, L, D)

    return jax.jit(fwd)


# ---------------------------------------------------------------------------------
# Pure-JAX f32 reference (mirrors the PyTorch forward exactly) for validation.
# ---------------------------------------------------------------------------------
def encoder_reference(x, mask, params):
    def ln(t, scale, bias):
        mean = t.mean(-1, keepdims=True)
        c = t - mean
        std = jnp.sqrt(jnp.sum(c * c, axis=-1, keepdims=True) / (D - 1))
        return scale * c / (std + EPS) + bias

    out = x
    for n in range(N_LAYERS):
        xn = ln(out, params["nscale"][n, 0], params["nbias"][n, 0])
        qkv = xn @ params["wqkv"][n] + params["bqkv"][n]
        q, k, v = qkv[..., :D], qkv[..., D:2 * D], qkv[..., 2 * D:]
        q = q.reshape(B, L, H, DK).transpose(0, 2, 1, 3)
        k = k.reshape(B, L, H, DK).transpose(0, 2, 1, 3)
        v = v.reshape(B, L, H, DK).transpose(0, 2, 1, 3)
        s = jnp.einsum("bhqd,bhkd->bhqk", q, k) / math.sqrt(DK)
        s = jnp.where(mask[:, None, :, :] == 0.0, -1e9, s)
        p = jax.nn.softmax(s, axis=-1)
        ctx = jnp.einsum("bhqk,bhkd->bhqd", p, v).transpose(0, 2, 1, 3).reshape(B, L, D)
        out = out + ctx @ params["wo"][n].reshape(D, D) + params["bo"][n]
        xn = ln(out, params["nscale"][n, 1], params["nbias"][n, 1])
        h1 = jnp.maximum(xn @ params["w1"][n] + params["b1"][n], 0.0)
        out = out + h1 @ params["w2"][n] + params["b2"][n]
    return ln(out, params["fscale"], params["fbias"])


# ---------------------------------------------------------------------------------
if __name__ == "__main__":
    key = jax.random.PRNGKey(0)
    keys = jax.random.split(key, 10)

    x = jax.random.normal(keys[0], (B, L, D), dtype=jnp.float32)
    mask = jnp.ones((B, L, L), dtype=jnp.float32)   # all positions attend

    params = {
        "wqkv": jax.random.normal(keys[1], (N_LAYERS, D, 3 * D), jnp.float32) * 0.05,
        "bqkv": jax.random.normal(keys[2], (N_LAYERS, 1, 3 * D), jnp.float32) * 0.01,
        "wo":   jax.random.normal(keys[3], (N_LAYERS, H, DK, D), jnp.float32) * 0.05,
        "bo":   jax.random.normal(keys[4], (N_LAYERS, 1, D), jnp.float32) * 0.01,
        "w1":   jax.random.normal(keys[5], (N_LAYERS, D, DFF), jnp.float32) * 0.05,
        "b1":   jax.random.normal(keys[6], (N_LAYERS, 1, DFF), jnp.float32) * 0.01,
        "w2":   jax.random.normal(keys[7], (N_LAYERS, DFF, D), jnp.float32) * 0.05,
        "b2":   jax.random.normal(keys[8], (N_LAYERS, 1, D), jnp.float32) * 0.01,
        # LayerNorm params initialized as in the module: ones / zeros.
        "nscale": jnp.ones((N_LAYERS, 2, 1, D), jnp.float32),
        "nbias":  jnp.zeros((N_LAYERS, 2, 1, D), jnp.float32),
        "fscale": jnp.ones((1, D), jnp.float32),
        "fbias":  jnp.zeros((1, D), jnp.float32),
    }

    encoder_forward = make_encoder_forward()
    out = jax.block_until_ready(encoder_forward(x, mask, params))
    ref = jax.block_until_ready(encoder_reference(x, mask, params))

    assert out.shape == (B, L, D)
    # bf16 matmul operands (weights scaled ~0.05) + approx (EUP) softmax reciprocal give
    # ~1e-3..1e-2 absolute deviation vs the f32 reference; LayerNorms use exact divides.
    assert jnp.allclose(out, ref, rtol=3e-2, atol=3e-2), "mismatch vs JAX reference"

    print("KERNEL_OK")
</pallas_src>

<mosaic_0001>
module attributes {stable_mosaic.version = 11 : i64} {
  func.func @encoder_kernel(%arg0: i32, %arg1: memref<16x32xf32, #tpu.memory_space<vmem>>, %arg2: memref<8x8x8xf32, #tpu.memory_space<vmem>>, %arg3: memref<1x32x96xbf16, #tpu.memory_space<vmem>>, %arg4: memref<1x1x96xf32, #tpu.memory_space<vmem>>, %arg5: memref<1x4x8x32xbf16, #tpu.memory_space<vmem>>, %arg6: memref<1x1x32xf32, #tpu.memory_space<vmem>>, %arg7: memref<1x32x64xbf16, #tpu.memory_space<vmem>>, %arg8: memref<1x1x64xf32, #tpu.memory_space<vmem>>, %arg9: memref<1x64x32xbf16, #tpu.memory_space<vmem>>, %arg10: memref<1x1x32xf32, #tpu.memory_space<vmem>>, %arg11: memref<1x2x1x32xf32, #tpu.memory_space<vmem>>, %arg12: memref<1x2x1x32xf32, #tpu.memory_space<vmem>>, %arg13: memref<1x32xf32, #tpu.memory_space<vmem>>, %arg14: memref<1x32xf32, #tpu.memory_space<vmem>>, %arg15: memref<16x32xf32, #tpu.memory_space<vmem>>, %arg16: memref<16x32xf32, #tpu.memory_space<vmem>>) attributes {dimension_semantics = [#tpu.dimension_semantics<arbitrary>], iteration_bounds = array<i64: 2>, scalar_prefetch = 0 : i64, scratch_operands = 1 : i64, tpu.core_type = #tpu.core_type<tc>, window_params = [{pipeline_mode = #tpu.pipeline_mode<synchronous>, transform_indices = @transform_0, window_bounds = array<i64: 16, 32>}, {pipeline_mode = #tpu.pipeline_mode<synchronous>, transform_indices = @transform_1, window_bounds = array<i64: 8, 8, 8>}, {transform_indices = @transform_2, window_bounds = array<i64: 1, 32, 96>}, {transform_indices = @transform_3, window_bounds = array<i64: 1, 1, 96>}, {transform_indices = @transform_4, window_bounds = array<i64: 1, 4, 8, 32>}, {transform_indices = @transform_5, window_bounds = array<i64: 1, 1, 32>}, {transform_indices = @transform_6, window_bounds = array<i64: 1, 32, 64>}, {transform_indices = @transform_7, window_bounds = array<i64: 1, 1, 64>}, {transform_indices = @transform_8, window_bounds = array<i64: 1, 64, 32>}, {transform_indices = @transform_9, window_bounds = array<i64: 1, 1, 32>}, {transform_indices = @transform_10, window_bounds = array<i64: 1, 2, 1, 32>}, {transform_indices = @transform_11, window_bounds = array<i64: 1, 2, 1, 32>}, {pipeline_mode = #tpu.pipeline_mode<synchronous>, transform_indices = @transform_12, window_bounds = array<i64: 1, 32>}, {pipeline_mode = #tpu.pipeline_mode<synchronous>, transform_indices = @transform_13, window_bounds = array<i64: 1, 32>}, {pipeline_mode = #tpu.pipeline_mode<synchronous>, transform_indices = @transform_14, window_bounds = array<i64: 16, 32>}]} {
    %c0_i32 = arith.constant 0 : i32
    %0 = arith.cmpi eq, %arg0, %c0_i32 : i32
    %1 = arith.extui %0 : i1 to i32
    %c0_i32_0 = arith.constant 0 : i32
    %2 = arith.cmpi ne, %1, %c0_i32_0 : i32
    scf.if %2 {
      %c0_80 = arith.constant 0 : index
      %c0_81 = arith.constant 0 : index
      %143 = vector.load %arg1[%c0_80, %c0_81] : memref<16x32xf32, #tpu.memory_space<vmem>>, vector<16x32xf32>
      %c0_82 = arith.constant 0 : index
      %c0_83 = arith.constant 0 : index
      %144 = vector.load %arg16[%c0_82, %c0_83] : memref<16x32xf32, #tpu.memory_space<vmem>>, vector<16x32xf32>
      tpu.vector_store %arg16[%c0_82, %c0_83], %143 {strides = array<i32>} : memref<16x32xf32, #tpu.memory_space<vmem>>, vector<16x32xf32>,
    } else {
    }
    %c0 = arith.constant 0 : index
    %c0_1 = arith.constant 0 : index
    %3 = vector.load %arg16[%c0, %c0_1] : memref<16x32xf32, #tpu.memory_space<vmem>>, vector<16x32xf32>
    %c0_2 = arith.constant 0 : index
    %c0_3 = arith.constant 0 : index
    %c0_4 = arith.constant 0 : index
    %4 = vector.load %arg2[%c0_2, %c0_3, %c0_4] : memref<8x8x8xf32, #tpu.memory_space<vmem>>, vector<8x8x8xf32>
    %c0_5 = arith.constant 0 : index
    %c0_6 = arith.constant 0 : index
    %c0_7 = arith.constant 0 : index
    %c0_8 = arith.constant 0 : index
    %5 = vector.load %arg11[%c0_5, %c0_6, %c0_7, %c0_8] : memref<1x2x1x32xf32, #tpu.memory_space<vmem>>, vector<1x1x1x32xf32>
    %6 = vector.shape_cast %5 : vector<1x1x1x32xf32> to vector<1x32xf32>
    %c0_9 = arith.constant 0 : index
    %c0_10 = arith.constant 0 : index
    %c0_11 = arith.constant 0 : index
    %c0_12 = arith.constant 0 : index
    %7 = vector.load %arg12[%c0_9, %c0_10, %c0_11, %c0_12] : memref<1x2x1x32xf32, #tpu.memory_space<vmem>>, vector<1x1x1x32xf32>
    %8 = vector.shape_cast %7 : vector<1x1x1x32xf32> to vector<1x32xf32>
    %cst = arith.constant dense<0.000000e+00> : vector<16xf32>
    %9 = vector.multi_reduction <add>, %3, %cst [1] : vector<16x32xf32> to vector<16xf32>
    %10 = vector.shape_cast %9 : vector<16xf32> to vector<16x1xf32>
    %cst_13 = arith.constant 3.200000e+01 : f32
    %11 = vector.broadcast %cst_13 : f32 to vector<16x1xf32>
    %12 = arith.divf %10, %11 : vector<16x1xf32>
    %13 = vector.broadcast %12 : vector<16x1xf32> to vector<16x32xf32>
    %14 = arith.subf %3, %13 : vector<16x32xf32>
    %15 = arith.mulf %14, %14 : vector<16x32xf32>
    %cst_14 = arith.constant dense<0.000000e+00> : vector<16xf32>
    %16 = vector.multi_reduction <add>, %15, %cst_14 [1] : vector<16x32xf32> to vector<16xf32>
    %17 = vector.shape_cast %16 : vector<16xf32> to vector<16x1xf32>
    %cst_15 = arith.constant 0.0322580636 : f32
    %18 = vector.broadcast %cst_15 : f32 to vector<16x1xf32>
    %19 = arith.mulf %17, %18 : vector<16x1xf32>
    %20 = math.sqrt %19 : vector<16x1xf32>
    %cst_16 = arith.constant 9.99999997E-7 : f32
    %21 = vector.broadcast %cst_16 : f32 to vector<16x1xf32>
    %22 = arith.addf %20, %21 : vector<16x1xf32>
    %23 = vector.broadcast %22 : vector<16x1xf32> to vector<16x32xf32>
    %24 = arith.divf %14, %23 : vector<16x32xf32>
    %25 = vector.broadcast %6 : vector<1x32xf32> to vector<16x32xf32>
    %26 = arith.mulf %25, %24 : vector<16x32xf32>
    %27 = vector.broadcast %8 : vector<1x32xf32> to vector<16x32xf32>
    %28 = arith.addf %26, %27 : vector<16x32xf32>
    %29 = arith.truncf %28 : vector<16x32xf32> to vector<16x32xbf16>
    %c0_17 = arith.constant 0 : index
    %c0_18 = arith.constant 0 : index
    %c0_19 = arith.constant 0 : index
    %30 = vector.load %arg3[%c0_17, %c0_18, %c0_19] : memref<1x32x96xbf16, #tpu.memory_space<vmem>>, vector<1x32x96xbf16>
    %31 = vector.shape_cast %30 : vector<1x32x96xbf16> to vector<32x96xbf16>
    %cst_20 = arith.constant dense<0.000000e+00> : vector<16x96xf32>
    %32 = tpu.matmul %29, %31, %cst_20 {dimension_numbers = #tpu.dot_dimension_numbers<[1], [0], [0], [1], [0, 0, 1, 1], [], []>} : vector<16x32xbf16>, vector<32x96xbf16>, vector<16x96xf32> -> vector<16x96xf32>
    %c0_21 = arith.constant 0 : index
    %c0_22 = arith.constant 0 : index
    %c0_23 = arith.constant 0 : index
    %33 = vector.load %arg4[%c0_21, %c0_22, %c0_23] : memref<1x1x96xf32, #tpu.memory_space<vmem>>, vector<1x1x96xf32>
    %34 = vector.shape_cast %33 : vector<1x1x96xf32> to vector<1x96xf32>
    %35 = vector.broadcast %34 : vector<1x96xf32> to vector<16x96xf32>
    %36 = arith.addf %32, %35 : vector<16x96xf32>
    %37 = vector.shape_cast %36 : vector<16x96xf32> to vector<16x12x8xf32>
    %38 = tpu.transpose %37, [1, 0, 2] : vector<16x12x8xf32> -> vector<12x16x8xf32>
    %39 = vector.extract_strided_slice %38 {offsets = [0, 0, 0], sizes = [4, 16, 8], strides = [1, 1, 1]} : vector<12x16x8xf32> to vector<4x16x8xf32>
    %40 = vector.shape_cast %39 : vector<4x16x8xf32> to vector<8x8x8xf32>
    %41 = arith.truncf %40 : vector<8x8x8xf32> to vector<8x8x8xbf16>
    %42 = vector.extract_strided_slice %38 {offsets = [4, 0, 0], sizes = [4, 16, 8], strides = [1, 1, 1]} : vector<12x16x8xf32> to vector<4x16x8xf32>
    %43 = vector.shape_cast %42 : vector<4x16x8xf32> to vector<8x8x8xf32>
    %44 = arith.truncf %43 : vector<8x8x8xf32> to vector<8x8x8xbf16>
    %45 = vector.extract_strided_slice %38 {offsets = [8, 0, 0], sizes = [4, 16, 8], strides = [1, 1, 1]} : vector<12x16x8xf32> to vector<4x16x8xf32>
    %46 = vector.shape_cast %45 : vector<4x16x8xf32> to vector<8x8x8xf32>
    %47 = arith.truncf %46 : vector<8x8x8xf32> to vector<8x8x8xbf16>
    "tpu.trace_start"() <{level = 10 : i32, message = "nqd,nkd->nqk"}> : () -> ()
    %cst_24 = arith.constant dense<0.000000e+00> : vector<8x8x8xf32>
    %48 = tpu.matmul %41, %44, %cst_24 {dimension_numbers = #tpu.dot_dimension_numbers<[2], [2], [1], [1], [0, 0, 0, 1, 1, 1], [0], [0]>} : vector<8x8x8xbf16>, vector<8x8x8xbf16>, vector<8x8x8xf32> -> vector<8x8x8xf32>
    "tpu.trace_stop"() : () -> ()
    %cst_25 = arith.constant 0.353553385 : f32
    %49 = vector.broadcast %cst_25 : f32 to vector<8x8x8xf32>
    %50 = arith.mulf %48, %49 : vector<8x8x8xf32>
    %51 = arith.addf %50, %4 : vector<8x8x8xf32>
    %cst_26 = arith.constant dense<0xFF800000> : vector<8x8xf32>
    %52 = vector.multi_reduction <maximumf>, %51, %cst_26 [2] : vector<8x8x8xf32> to vector<8x8xf32>
    %53 = vector.shape_cast %52 : vector<8x8xf32> to vector<8x8x1xf32>
    %54 = vector.broadcast %53 : vector<8x8x1xf32> to vector<8x8x8xf32>
    %55 = arith.subf %51, %54 : vector<8x8x8xf32>
    %56 = math.exp %55 : vector<8x8x8xf32>
    %cst_27 = arith.constant dense<0.000000e+00> : vector<8x8xf32>
    %57 = vector.multi_reduction <add>, %56, %cst_27 [2] : vector<8x8x8xf32> to vector<8x8xf32>
    %58 = vector.shape_cast %57 : vector<8x8xf32> to vector<8x8x1xf32>
    %59 = tpu.reciprocal %58 {approx = true} : vector<8x8x1xf32> -> vector<8x8x1xf32>
    %60 = vector.broadcast %59 : vector<8x8x1xf32> to vector<8x8x8xf32>
    %61 = arith.mulf %56, %60 : vector<8x8x8xf32>
    %62 = arith.truncf %61 : vector<8x8x8xf32> to vector<8x8x8xbf16>
    "tpu.trace_start"() <{level = 10 : i32, message = "nqk,nkd->nqd"}> : () -> ()
    %cst_28 = arith.constant dense<0.000000e+00> : vector<8x8x8xf32>
    %63 = tpu.matmul %62, %47, %cst_28 {dimension_numbers = #tpu.dot_dimension_numbers<[2], [1], [1], [2], [0, 0, 0, 1, 1, 2], [0], [0]>} : vector<8x8x8xbf16>, vector<8x8x8xbf16>, vector<8x8x8xf32> -> vector<8x8x8xf32>
    "tpu.trace_stop"() : () -> ()
    %64 = vector.extract_strided_slice %63 {offsets = [0, 0, 0], sizes = [2, 8, 8], strides = [1, 1, 1]} : vector<8x8x8xf32> to vector<2x8x8xf32>
    %65 = vector.shape_cast %64 : vector<2x8x8xf32> to vector<16x8xf32>
    %66 = arith.truncf %65 : vector<16x8xf32> to vector<16x8xbf16>
    %c0_29 = arith.constant 0 : index
    %c0_30 = arith.constant 0 : index
    %c0_31 = arith.constant 0 : index
    %c0_32 = arith.constant 0 : index
    %67 = vector.load %arg5[%c0_29, %c0_30, %c0_31, %c0_32] : memref<1x4x8x32xbf16, #tpu.memory_space<vmem>>, vector<1x1x8x32xbf16>
    %68 = vector.shape_cast %67 : vector<1x1x8x32xbf16> to vector<8x32xbf16>
    %cst_33 = arith.constant dense<0.000000e+00> : vector<16x32xf32>
    %69 = tpu.matmul %66, %68, %cst_33 {dimension_numbers = #tpu.dot_dimension_numbers<[1], [0], [0], [1], [0, 0, 1, 1], [], []>} : vector<16x8xbf16>, vector<8x32xbf16>, vector<16x32xf32> -> vector<16x32xf32>
    %70 = vector.extract_strided_slice %63 {offsets = [2, 0, 0], sizes = [2, 8, 8], strides = [1, 1, 1]} : vector<8x8x8xf32> to vector<2x8x8xf32>
    %71 = vector.shape_cast %70 : vector<2x8x8xf32> to vector<16x8xf32>
    %72 = arith.truncf %71 : vector<16x8xf32> to vector<16x8xbf16>
    %c0_34 = arith.constant 0 : index
    %c1 = arith.constant 1 : index
    %c0_35 = arith.constant 0 : index
    %c0_36 = arith.constant 0 : index
    %73 = vector.load %arg5[%c0_34, %c1, %c0_35, %c0_36] : memref<1x4x8x32xbf16, #tpu.memory_space<vmem>>, vector<1x1x8x32xbf16>
    %74 = vector.shape_cast %73 : vector<1x1x8x32xbf16> to vector<8x32xbf16>
    %cst_37 = arith.constant dense<0.000000e+00> : vector<16x32xf32>
    %75 = tpu.matmul %72, %74, %cst_37 {dimension_numbers = #tpu.dot_dimension_numbers<[1], [0], [0], [1], [0, 0, 1, 1], [], []>} : vector<16x8xbf16>, vector<8x32xbf16>, vector<16x32xf32> -> vector<16x32xf32>
    %76 = arith.addf %69, %75 : vector<16x32xf32>
    %77 = vector.extract_strided_slice %63 {offsets = [4, 0, 0], sizes = [2, 8, 8], strides = [1, 1, 1]} : vector<8x8x8xf32> to vector<2x8x8xf32>
    %78 = vector.shape_cast %77 : vector<2x8x8xf32> to vector<16x8xf32>
    %79 = arith.truncf %78 : vector<16x8xf32> to vector<16x8xbf16>
    %c0_38 = arith.constant 0 : index
    %c2 = arith.constant 2 : index
    %c0_39 = arith.constant 0 : index
    %c0_40 = arith.constant 0 : index
    %80 = vector.load %arg5[%c0_38, %c2, %c0_39, %c0_40] : memref<1x4x8x32xbf16, #tpu.memory_space<vmem>>, vector<1x1x8x32xbf16>
    %81 = vector.shape_cast %80 : vector<1x1x8x32xbf16> to vector<8x32xbf16>
    %cst_41 = arith.constant dense<0.000000e+00> : vector<16x32xf32>
    %82 = tpu.matmul %79, %81, %cst_41 {dimension_numbers = #tpu.dot_dimension_numbers<[1], [0], [0], [1], [0, 0, 1, 1], [], []>} : vector<16x8xbf16>, vector<8x32xbf16>, vector<16x32xf32> -> vector<16x32xf32>
    %83 = arith.addf %76, %82 : vector<16x32xf32>
    %84 = vector.extract_strided_slice %63 {offsets = [6, 0, 0], sizes = [2, 8, 8], strides = [1, 1, 1]} : vector<8x8x8xf32> to vector<2x8x8xf32>
    %85 = vector.shape_cast %84 : vector<2x8x8xf32> to vector<16x8xf32>
    %86 = arith.truncf %85 : vector<16x8xf32> to vector<16x8xbf16>
    %c0_42 = arith.constant 0 : index
    %c3 = arith.constant 3 : index
    %c0_43 = arith.constant 0 : index
    %c0_44 = arith.constant 0 : index
    %87 = vector.load %arg5[%c0_42, %c3, %c0_43, %c0_44] : memref<1x4x8x32xbf16, #tpu.memory_space<vmem>>, vector<1x1x8x32xbf16>
    %88 = vector.shape_cast %87 : vector<1x1x8x32xbf16> to vector<8x32xbf16>
    %cst_45 = arith.constant dense<0.000000e+00> : vector<16x32xf32>
    %89 = tpu.matmul %86, %88, %cst_45 {dimension_numbers = #tpu.dot_dimension_numbers<[1], [0], [0], [1], [0, 0, 1, 1], [], []>} : vector<16x8xbf16>, vector<8x32xbf16>, vector<16x32xf32> -> vector<16x32xf32>
    %90 = arith.addf %83, %89 : vector<16x32xf32>
    %91 = arith.addf %3, %90 : vector<16x32xf32>
    %c0_46 = arith.constant 0 : index
    %c0_47 = arith.constant 0 : index
    %c0_48 = arith.constant 0 : index
    %92 = vector.load %arg6[%c0_46, %c0_47, %c0_48] : memref<1x1x32xf32, #tpu.memory_space<vmem>>, vector<1x1x32xf32>
    %93 = vector.shape_cast %92 : vector<1x1x32xf32> to vector<1x32xf32>
    %94 = vector.broadcast %93 : vector<1x32xf32> to vector<16x32xf32>
    %95 = arith.addf %91, %94 : vector<16x32xf32>
    %c0_49 = arith.constant 0 : index
    %c1_50 = arith.constant 1 : index
    %c0_51 = arith.constant 0 : index
    %c0_52 = arith.constant 0 : index
    %96 = vector.load %arg11[%c0_49, %c1_50, %c0_51, %c0_52] : memref<1x2x1x32xf32, #tpu.memory_space<vmem>>, vector<1x1x1x32xf32>
    %97 = vector.shape_cast %96 : vector<1x1x1x32xf32> to vector<1x32xf32>
    %c0_53 = arith.constant 0 : index
    %c1_54 = arith.constant 1 : index
    %c0_55 = arith.constant 0 : index
    %c0_56 = arith.constant 0 : index
    %98 = vector.load %arg12[%c0_53, %c1_54, %c0_55, %c0_56] : memref<1x2x1x32xf32, #tpu.memory_space<vmem>>, vector<1x1x1x32xf32>
    %99 = vector.shape_cast %98 : vector<1x1x1x32xf32> to vector<1x32xf32>
    %cst_57 = arith.constant dense<0.000000e+00> : vector<16xf32>
    %100 = vector.multi_reduction <add>, %95, %cst_57 [1] : vector<16x32xf32> to vector<16xf32>
    %101 = vector.shape_cast %100 : vector<16xf32> to vector<16x1xf32>
    %cst_58 = arith.constant 3.200000e+01 : f32
    %102 = vector.broadcast %cst_58 : f32 to vector<16x1xf32>
    %103 = arith.divf %101, %102 : vector<16x1xf32>
    %104 = vector.broadcast %103 : vector<16x1xf32> to vector<16x32xf32>
    %105 = arith.subf %95, %104 : vector<16x32xf32>
    %106 = arith.mulf %105, %105 : vector<16x32xf32>
    %cst_59 = arith.constant dense<0.000000e+00> : vector<16xf32>
    %107 = vector.multi_reduction <add>, %106, %cst_59 [1] : vector<16x32xf32> to vector<16xf32>
    %108 = vector.shape_cast %107 : vector<16xf32> to vector<16x1xf32>
    %cst_60 = arith.constant 0.0322580636 : f32
    %109 = vector.broadcast %cst_60 : f32 to vector<16x1xf32>
    %110 = arith.mulf %108, %109 : vector<16x1xf32>
    %111 = math.sqrt %110 : vector<16x1xf32>
    %cst_61 = arith.constant 9.99999997E-7 : f32
    %112 = vector.broadcast %cst_61 : f32 to vector<16x1xf32>
    %113 = arith.addf %111, %112 : vector<16x1xf32>
    %114 = vector.broadcast %113 : vector<16x1xf32> to vector<16x32xf32>
    %115 = arith.divf %105, %114 : vector<16x32xf32>
    %116 = vector.broadcast %97 : vector<1x32xf32> to vector<16x32xf32>
    %117 = arith.mulf %116, %115 : vector<16x32xf32>
    %118 = vector.broadcast %99 : vector<1x32xf32> to vector<16x32xf32>
    %119 = arith.addf %117, %118 : vector<16x32xf32>
    %120 = arith.truncf %119 : vector<16x32xf32> to vector<16x32xbf16>
    %c0_62 = arith.constant 0 : index
    %c0_63 = arith.constant 0 : index
    %c0_64 = arith.constant 0 : index
    %121 = vector.load %arg7[%c0_62, %c0_63, %c0_64] : memref<1x32x64xbf16, #tpu.memory_space<vmem>>, vector<1x32x64xbf16>
    %122 = vector.shape_cast %121 : vector<1x32x64xbf16> to vector<32x64xbf16>
    %cst_65 = arith.constant dense<0.000000e+00> : vector<16x64xf32>
    %123 = tpu.matmul %120, %122, %cst_65 {dimension_numbers = #tpu.dot_dimension_numbers<[1], [0], [0], [1], [0, 0, 1, 1], [], []>} : vector<16x32xbf16>, vector<32x64xbf16>, vector<16x64xf32> -> vector<16x64xf32>
    %c0_66 = arith.constant 0 : index
    %c0_67 = arith.constant 0 : index
    %c0_68 = arith.constant 0 : index
    %124 = vector.load %arg8[%c0_66, %c0_67, %c0_68] : memref<1x1x64xf32, #tpu.memory_space<vmem>>, vector<1x1x64xf32>
    %125 = vector.shape_cast %124 : vector<1x1x64xf32> to vector<1x64xf32>
    %126 = vector.broadcast %125 : vector<1x64xf32> to vector<16x64xf32>
    %127 = arith.addf %123, %126 : vector<16x64xf32>
    %cst_69 = arith.constant 0.000000e+00 : f32
    %128 = vector.broadcast %cst_69 : f32 to vector<16x64xf32>
    %129 = arith.maximumf %127, %128 : vector<16x64xf32>
    %130 = arith.truncf %129 : vector<16x64xf32> to vector<16x64xbf16>
    %c0_70 = arith.constant 0 : index
    %c0_71 = arith.constant 0 : index
    %c0_72 = arith.constant 0 : index
    %131 = vector.load %arg9[%c0_70, %c0_71, %c0_72] : memref<1x64x32xbf16, #tpu.memory_space<vmem>>, vector<1x64x32xbf16>
    %132 = vector.shape_cast %131 : vector<1x64x32xbf16> to vector<64x32xbf16>
    %cst_73 = arith.constant dense<0.000000e+00> : vector<16x32xf32>
    %133 = tpu.matmul %130, %132, %cst_73 {dimension_numbers = #tpu.dot_dimension_numbers<[1], [0], [0], [1], [0, 0, 1, 1], [], []>} : vector<16x64xbf16>, vector<64x32xbf16>, vector<16x32xf32> -> vector<16x32xf32>
    %134 = arith.addf %95, %133 : vector<16x32xf32>
    %c0_74 = arith.constant 0 : index
    %c0_75 = arith.constant 0 : index
    %c0_76 = arith.constant 0 : index
    %135 = vector.load %arg10[%c0_74, %c0_75, %c0_76] : memref<1x1x32xf32, #tpu.memory_space<vmem>>, vector<1x1x32xf32>
    %136 = vector.shape_cast %135 : vector<1x1x32xf32> to vector<1x32xf32>
    %137 = vector.broadcast %136 : vector<1x32xf32> to vector<16x32xf32>
    %138 = arith.addf %134, %137 : vector<16x32xf32>
    %c0_77 = arith.constant 0 : index
    %c0_78 = arith.constant 0 : index
    %139 = vector.load %arg16[%c0_77, %c0_78] : memref<16x32xf32, #tpu.memory_space<vmem>>, vector<16x32xf32>
    tpu.vector_store %arg16[%c0_77, %c0_78], %138 {strides = array<i32>} : memref<16x32xf32, #tpu.memory_space<vmem>>, vector<16x32xf32>,
    %c1_i32 = arith.constant 1 : i32
    %140 = arith.cmpi eq, %arg0, %c1_i32 : i32
    %141 = arith.extui %140 : i1 to i32
    %c0_i32_79 = arith.constant 0 : i32
    %142 = arith.cmpi ne, %141, %c0_i32_79 : i32
    scf.if %142 {
      %c0_80 = arith.constant 0 : index
      %c0_81 = arith.constant 0 : index
      %143 = vector.load %arg13[%c0_80, %c0_81] : memref<1x32xf32, #tpu.memory_space<vmem>>, vector<1x32xf32>
      %c0_82 = arith.constant 0 : index
      %c0_83 = arith.constant 0 : index
      %144 = vector.load %arg14[%c0_82, %c0_83] : memref<1x32xf32, #tpu.memory_space<vmem>>, vector<1x32xf32>
      %cst_84 = arith.constant dense<0.000000e+00> : vector<16xf32>
      %145 = vector.multi_reduction <add>, %138, %cst_84 [1] : vector<16x32xf32> to vector<16xf32>
      %146 = vector.shape_cast %145 : vector<16xf32> to vector<16x1xf32>
      %cst_85 = arith.constant 3.200000e+01 : f32
      %147 = vector.broadcast %cst_85 : f32 to vector<16x1xf32>
      %148 = arith.divf %146, %147 : vector<16x1xf32>
      %149 = vector.broadcast %148 : vector<16x1xf32> to vector<16x32xf32>
      %150 = arith.subf %138, %149 : vector<16x32xf32>
      %151 = arith.mulf %150, %150 : vector<16x32xf32>
      %cst_86 = arith.constant dense<0.000000e+00> : vector<16xf32>
      %152 = vector.multi_reduction <add>, %151, %cst_86 [1] : vector<16x32xf32> to vector<16xf32>
      %153 = vector.shape_cast %152 : vector<16xf32> to vector<16x1xf32>
      %cst_87 = arith.constant 0.0322580636 : f32
      %154 = vector.broadcast %cst_87 : f32 to vector<16x1xf32>
      %155 = arith.mulf %153, %154 : vector<16x1xf32>
      %156 = math.sqrt %155 : vector<16x1xf32>
      %cst_88 = arith.constant 9.99999997E-7 : f32
      %157 = vector.broadcast %cst_88 : f32 to vector<16x1xf32>
      %158 = arith.addf %156, %157 : vector<16x1xf32>
      %159 = vector.broadcast %158 : vector<16x1xf32> to vector<16x32xf32>
      %160 = arith.divf %150, %159 : vector<16x32xf32>
      %161 = vector.broadcast %143 : vector<1x32xf32> to vector<16x32xf32>
      %162 = arith.mulf %161, %160 : vector<16x32xf32>
      %163 = vector.broadcast %144 : vector<1x32xf32> to vector<16x32xf32>
      %164 = arith.addf %162, %163 : vector<16x32xf32>
      %c0_89 = arith.constant 0 : index
      %c0_90 = arith.constant 0 : index
      %165 = vector.load %arg15[%c0_89, %c0_90] : memref<16x32xf32, #tpu.memory_space<vmem>>, vector<16x32xf32>
      tpu.vector_store %arg15[%c0_89, %c0_90], %164 {strides = array<i32>} : memref<16x32xf32, #tpu.memory_space<vmem>>, vector<16x32xf32>,
    } else {
    }
    return
  }
  func.func @transform_0(%arg0: i32) -> (i32, i32) {
    %c0_i32 = arith.constant 0 : i32
    %c0_i32_0 = arith.constant 0 : i32
    %c0_i32_1 = arith.constant 0 : i32
    return %c0_i32, %c0_i32_0 : i32, i32
  }
  func.func @transform_1(%arg0: i32) -> (i32, i32, i32) {
    %c0_i32 = arith.constant 0 : i32
    %c0_i32_0 = arith.constant 0 : i32
    %c0_i32_1 = arith.constant 0 : i32
    %c0_i32_2 = arith.constant 0 : i32
    return %c0_i32, %c0_i32_0, %c0_i32_1 : i32, i32, i32
  }
  func.func @transform_2(%arg0: i32) -> (i32, i32, i32) {
    %c0_i32 = arith.constant 0 : i32
    %c0_i32_0 = arith.constant 0 : i32
    %c0_i32_1 = arith.constant 0 : i32
    return %arg0, %c0_i32, %c0_i32_0 : i32, i32, i32
  }
  func.func @transform_3(%arg0: i32) -> (i32, i32, i32) {
    %c0_i32 = arith.constant 0 : i32
    %c0_i32_0 = arith.constant 0 : i32
    %c0_i32_1 = arith.constant 0 : i32
    return %arg0, %c0_i32, %c0_i32_0 : i32, i32, i32
  }
  func.func @transform_4(%arg0: i32) -> (i32, i32, i32, i32) {
    %c0_i32 = arith.constant 0 : i32
    %c0_i32_0 = arith.constant 0 : i32
    %c0_i32_1 = arith.constant 0 : i32
    %c0_i32_2 = arith.constant 0 : i32
    return %arg0, %c0_i32, %c0_i32_0, %c0_i32_1 : i32, i32, i32, i32
  }
  func.func @transform_5(%arg0: i32) -> (i32, i32, i32) {
    %c0_i32 = arith.constant 0 : i32
    %c0_i32_0 = arith.constant 0 : i32
    %c0_i32_1 = arith.constant 0 : i32
    return %arg0, %c0_i32, %c0_i32_0 : i32, i32, i32
  }
  func.func @transform_6(%arg0: i32) -> (i32, i32, i32) {
    %c0_i32 = arith.constant 0 : i32
    %c0_i32_0 = arith.constant 0 : i32
    %c0_i32_1 = arith.constant 0 : i32
    return %arg0, %c0_i32, %c0_i32_0 : i32, i32, i32
  }
  func.func @transform_7(%arg0: i32) -> (i32, i32, i32) {
    %c0_i32 = arith.constant 0 : i32
    %c0_i32_0 = arith.constant 0 : i32
    %c0_i32_1 = arith.constant 0 : i32
    return %arg0, %c0_i32, %c0_i32_0 : i32, i32, i32
  }
  func.func @transform_8(%arg0: i32) -> (i32, i32, i32) {
    %c0_i32 = arith.constant 0 : i32
    %c0_i32_0 = arith.constant 0 : i32
    %c0_i32_1 = arith.constant 0 : i32
    return %arg0, %c0_i32, %c0_i32_0 : i32, i32, i32
  }
  func.func @transform_9(%arg0: i32) -> (i32, i32, i32) {
    %c0_i32 = arith.constant 0 : i32
    %c0_i32_0 = arith.constant 0 : i32
    %c0_i32_1 = arith.constant 0 : i32
    return %arg0, %c0_i32, %c0_i32_0 : i32, i32, i32
  }
  func.func @transform_10(%arg0: i32) -> (i32, i32, i32, i32) {
    %c0_i32 = arith.constant 0 : i32
    %c0_i32_0 = arith.constant 0 : i32
    %c0_i32_1 = arith.constant 0 : i32
    %c0_i32_2 = arith.constant 0 : i32
    return %arg0, %c0_i32, %c0_i32_0, %c0_i32_1 : i32, i32, i32, i32
  }
  func.func @transform_11(%arg0: i32) -> (i32, i32, i32, i32) {
    %c0_i32 = arith.constant 0 : i32
    %c0_i32_0 = arith.constant 0 : i32
    %c0_i32_1 = arith.constant 0 : i32
    %c0_i32_2 = arith.constant 0 : i32
    return %arg0, %c0_i32, %c0_i32_0, %c0_i32_1 : i32, i32, i32, i32
  }
  func.func @transform_12(%arg0: i32) -> (i32, i32) {
    %c0_i32 = arith.constant 0 : i32
    %c0_i32_0 = arith.constant 0 : i32
    %c0_i32_1 = arith.constant 0 : i32
    return %c0_i32, %c0_i32_0 : i32, i32
  }
  func.func @transform_13(%arg0: i32) -> (i32, i32) {
    %c0_i32 = arith.constant 0 : i32
    %c0_i32_0 = arith.constant 0 : i32
    %c0_i32_1 = arith.constant 0 : i32
    return %c0_i32, %c0_i32_0 : i32, i32
  }
  func.func @transform_14(%arg0: i32) -> (i32, i32) {
    %c0_i32 = arith.constant 0 : i32
    %c0_i32_0 = arith.constant 0 : i32
    %c0_i32_1 = arith.constant 0 : i32
    return %c0_i32, %c0_i32_0 : i32, i32
  }
}

</mosaic_0001>

<bundles_post_ra>
// kernel: fwd.1
= control target key start
LH: loop header
LB: loop body
LE: loop exit
PB: predicated region body
PF: predicated region fallthrough
CT: control target
= control target key end

     0   :  { %s4254_s0 = inlined_call_operand.vmem [shape: f32[16,32], index: 0, kind: input, shape index: {}]   ;;  %s4255_s1 = inlined_call_operand.vmem [shape: f32[8,8,8], index: 1, kind: input, shape index: {}]   ;;  %s4256_s2 = inlined_call_operand.vmem [shape: bf16[2,32,96], index: 2, kind: input, shape index: {}]   ;;  %s4257_s3 = inlined_call_operand.vmem [shape: f32[2,1,96], index: 3, kind: input, shape index: {}]   ;;  %s4258_s4 = inlined_call_operand.vmem [shape: bf16[2,4,8,32], index: 4, kind: input, shape index: {}]   ;;  %s4259_s5 = inlined_call_operand.vmem [shape: f32[2,1,32], index: 5, kind: input, shape index: {}]   ;;  %s4260_s6 = inlined_call_operand.vmem [shape: bf16[2,32,64], index: 6, kind: input, shape index: {}]   ;;  %s4261_s7 = inlined_call_operand.vmem [shape: f32[2,1,64], index: 7, kind: input, shape index: {}]   ;;  %s4262_s8 = inlined_call_operand.vmem [shape: bf16[2,64,32], index: 8, kind: input, shape index: {}]   ;;  %s4263_s9 = inlined_call_operand.vmem [shape: f32[2,1,32], index: 9, kind: input, shape index: {}]   ;;  %s4264_s10 = inlined_call_operand.vmem [shape: f32[2,2,1,32], index: 10, kind: input, shape index: {}]   ;;  %s4265_s11 = inlined_call_operand.vmem [shape: f32[2,2,1,32], index: 11, kind: input, shape index: {}]   ;;  %s4266_s12 = inlined_call_operand.vmem [shape: f32[1,32], index: 12, kind: input, shape index: {}]   ;;  %s4267_s13 = inlined_call_operand.vmem [shape: f32[1,32], index: 13, kind: input, shape index: {}]   ;;  %s4268_s14 = inlined_call_operand.hbm [shape: f32[16,32], index: 14, kind: output, shape index: {}]  }
   0x1   :  { %4271 = sst [smem:[#allocation7_spill]] %s4256_s2 }
   0x2   :  { %4272 = sst [smem:[#allocation8_spill]] %s4258_s4 }
   0x3   :  { %4273 = sst [smem:[#allocation9_spill]] %s4266_s12 }
   0x4   :  { %4274 = sst [smem:[#allocation10_spill]] %s4267_s13 }
   0x5   :  { %4275 = sst [smem:[#allocation11_spill]] %s4268_s14 }
   0x6   :  { %19 = vsyncpa [#allocation4], 0  ;;  %s3671_s29 = smov 0  }
   0x7 LB: > { %4276 = sst [smem:[#allocation6_spill]] %s3576_s29  ;;  %s3677_s30 = sadd.s32 4294967295, %s3576_s29   ;;  %s3576_s29 = sphi %s3671_s29, %s25_s29  }
   0x8   : > { %p3156_p0 = scmp.ge.s32.totalorder %s3576_s29, 1  ;;  %p488_p1 = scmp.lt.s32.totalorder %s3576_s29, 3 }
   0xa   : > { %p489_p2 = pnand %p3156_p0, %p488_p1 }
   0xb   : > { %p564_p3 = scmp.lt.s32.totalorder (!%p489_p2), %s3677_s30, 1  ;;  %s4277_s2 = sld [smem:[#allocation7_spill]] (!%p489_p2) }
   0xc   : > { %492 = sbr.rel (%p489_p2) target bundleno = 2910 (0xb5e), region = 76  ;;  %s4278_s4 = sld [smem:[#allocation8_spill]] (!%p489_p2) }
   0xd   : > { %p3167_p4 = scmp.ne.s32.totalorder (!%p489_p2), %s3677_s30, 0 }
  0x13   : > { %s3683_s15 = scalar_select %p564_p3, %s3677_s30, 1 }
  0x14   : > { %608 = sbr.rel (%p3167_p4) target bundleno = 27 (0x1b), region = 80  ;;  %v609_v0 = vld [vmem:[%s4254_s0] sm:$0xff] (!%p3167_p4)  ;;  %vm611_vm0 = vcmask (!%p3167_p4), 261120   ;;  %v610_v1 = vld [vmem:[%s4254_s0 + $0x8] sm:$0xff] (!%p3167_p4) }
  0x15   : > { %s3239_s16 = sshll.u32 %s3683_s15, 4  ;;  %s587_s20 = scalar_lea.vmem %s4261_s7, %s3683_s15  ;;  %612 = vst.msk [vmem:[#allocation2] sm:$0xff] (!%p3167_p4), %vm611_vm0, %v609_v0  ;;  %613 = vst.msk [vmem:[#allocation2 + $0x8] sm:$0xff] (!%p3167_p4), %vm611_vm0, %v610_v1 }
  0x16   : > { %s3693_s22 = scalar_lea.vmem %s4277_s2, %s3239_s16  ;;  %s3698_s25 = scalar_lea.vmem %s4278_s4, %s3239_s16 }
  0x17   : > { %s3707_s13 = scalar_lea.vmem %s4260_s6, %s3239_s16  ;;  %s3242_s21 = sshll.u32 %s3683_s15, 5 }
  0x18   : > { %s3717_s23 = scalar_lea.vmem %s4262_s8, %s3242_s21  ;;  %s595_s26 = scalar_lea.vmem %s4263_s9, %s3683_s15 }
  0x19   : > { %s3165_s27 = sshll.u32 %s3683_s15, 1 }
  0x1a   : > { %s3727_s14 = scalar_lea.vmem %s4264_s10, %s3165_s27  ;;  %s3732_s17 = scalar_lea.vmem %s4265_s11, %s3165_s27 }
  0x1b PF: > { %vm626_vm1 = vcmask 261120   ;;  %v3474_v16 = vld [vmem:[%s3693_s22] sm:$0xff]   ;;  %v3578_v17 = vmov 0.0   ;;  %vm3579_vm2 = vmmov 0   ;;  %v3475_v18 = vld [vmem:[%s3693_s22 + $0x8] sm:$0xff]   ;;  %s4279_s28 = scalar_lea.vmem %s4257_s3, %s3683_s15  ;;  %s3580_s21 = smov 88   ;;  %v825_v55 = vlaneseq }
  0x1c   : > { %v614_v2 = vld [vmem:[#allocation2] sm:$0xff]  ;;  %v615_v3 = vld [vmem:[#allocation2 + $0x8] sm:$0xff]  ;;  %3294 = vmatprep.subr.bf16.mxu1 %v3578_v17  ;;  %3298 = vmatprep.mubr.msk.bf16.mxu1 %vm3579_vm2, %v3578_v17  ;;  %s3581_s24 = smov 96   ;;  %s3582_s27 = smov 80   ;;  %v3589_v53 = vmov 1983009808  }
  0x1d   : > { %v627_v4 = vsel %vm626_vm1, %v614_v2, 0.0  ;;  %v630_v5 = vsel %vm626_vm1, %v615_v3, 0.0  ;;  %3295 = vmatpush3.bf16.msra.mxu1 %v3474_v16  ;;  %3308 = vmatprep.subr.bf16.mxu0 %v3578_v17  ;;  %v3168_v37 = vld [vmem:[%s3727_s14] ss:$0 sm:$0xff]  ;;  %s3583_s29 = smov 72   ;;  %s3584_s16 = smov 120   ;;  %v823_v54 = vunpack.c.l.s4 %v3589_v53 }
  0x1e   : > { %628 = vadd.xlane.f32.xlu0 %v627_v4  ;;  %3296 = vmatprep.subr.bf16.mxu1 %v3578_v17  ;;  %v3169_v41 = vld [vmem:[%s3732_s17] ss:$0 sm:$0xff]  ;;  %s3585_s2 = smov 112   ;;  %s3586_s19 = smov 104   ;;  %v3590_v58 = vmov 1934713408  }
  0x1f   : > { %3310 = vmatprep.mubr.msk.bf16.mxu0 %vm3579_vm2, %v3578_v17  ;;  %v3170_v46 = vld [vmem:[%s4279_s28] ss:$0 sm:$0xff]  ;;  %s3587_s4 = smov 64   ;;  %s3588_s18 = smov 56   ;;  %v887_v59 = vunpack.c.l.s4 %v3590_v58  ;;  %v824_v60 = vunpack.c.0.s8 %v823_v54  ;;  %v826_v61 = vshrl.u32 %v825_v55, 7  ;;  %vm1660_vm7 = vcmask 64512  }
  0x20   : > { %vm2144_vm8 = vcmask 1043456   ;;  %vm2887_vm13 = vcmask 523264   ;;  %p3232_p5 = scmp.ne.s32.totalorder %s3677_s30, 1 }
  0x21   : > { %3297 = vmatpush3.bf16.msra.mxu1 %v3475_v18  ;;  %v888_v0 = vunpack.c.0.s8 %v887_v59  ;;  %v3787_v1 = vsub.s32 %v824_v60, %v826_v61 }
  0x22   : > { %631 = vadd.xlane.f32.xlu0 %v630_v5  ;;  %3302 = vmatprep.subr.bf16.mxu1 %v3578_v17 }
  0xab   : > { %v629_v6 = vpop.xlane.xlu0 %628 }
  0xac   : > { %v634_v7 = vmul.f32 0.03125, %v629_v6 }
  0xae   : > { %v636_v8 = vsub.f32 %v614_v2, %v634_v7 }
  0xaf   : > { %v632_v9 = vpop.xlane.xlu0 %631 }
  0xb0   : > { %v635_v10 = vmul.f32 0.03125, %v632_v9  ;;  %v638_v11 = vmul.f32 %v636_v8, %v636_v8 }
  0xb2   : > { %v637_v12 = vsub.f32 %v615_v3, %v635_v10  ;;  %v640_v13 = vsel %vm626_vm1, %v638_v11, 0.0 }
  0xb3   : > { %641 = vadd.xlane.f32.xlu1 %v640_v13 }
  0xb4   : > { %v639_v14 = vmul.f32 %v637_v12, %v637_v12 }
  0xb6   : > { %v643_v15 = vsel %vm626_vm1, %v639_v14, 0.0 }
  0xb7   : > { %644 = vadd.xlane.f32.xlu1 %v643_v15 }
 0x140   : > { %v642_v19 = vpop.xlane.xlu1 %641 }
 0x141   : > { %v646_v20 = vmul.f32 0.032258064, %v642_v19 }
 0x143   : > { %3482 = vrsqrt.f32 %v646_v20  ;;  %vm650_vm3 = vcmp.eq.f32.partialorder %v646_v20, inf  ;;  %v653_v25 = vand.u32 2147483648, %v646_v20  ;;  %vm652_vm4 = vcmp.eq.f32.partialorder %v646_v20, 0.0 }
 0x144   : > { %v645_v21 = vpop.xlane.xlu1 %644 }
 0x145   : > { %v647_v22 = vmul.f32 0.032258064, %v645_v21 }
 0x147   : > { %3484 = vrsqrt.f32 %v647_v22  ;;  %vm657_vm5 = vcmp.eq.f32.partialorder %v647_v22, inf  ;;  %v660_v31 = vand.u32 2147483648, %v647_v22  ;;  %vm659_vm6 = vcmp.eq.f32.partialorder %v647_v22, 0.0 }
 0x14d   : > { %v3483_v23 = vpop.eup %3482 }
 0x14e   : > { %v649_v24 = vmul.f32 %v3483_v23, %v646_v20 }
 0x150   : > { %v651_v26 = vsel %vm650_vm3, %v646_v20, %v649_v24 }
 0x151   : > { %v3485_v27 = vpop.eup %3484  ;;  %v654_v28 = vsel %vm652_vm4, %v653_v25, %v651_v26 }
 0x152   : > { %v662_v29 = vadd.f32 1e-06, %v654_v28  ;;  %v656_v30 = vmul.f32 %v3485_v27, %v647_v22 }
 0x154   : > { %3486 = vrcp.f32 %v662_v29  ;;  %v658_v32 = vsel %vm657_vm5, %v647_v22, %v656_v30 }
 0x155   : > { %v661_v33 = vsel %vm659_vm6, %v660_v31, %v658_v32 }
 0x156   : > { %v663_v34 = vadd.f32 1e-06, %v661_v33 }
 0x158   : > { %3488 = vrcp.f32 %v663_v34 }
 0x15e   : > { %v3487_v35 = vpop.eup %3486 }
 0x15f   : > { %v665_v36 = vmul.f32 %v3487_v35, %v636_v8  ;;  %v3789_v8 = vsub.s32 %v888_v0, %v826_v61 }
 0x161   : > { %v674_v40 = vmul.f32 %v3168_v37, %v665_v36 }
 0x162   : > { %v3489_v38 = vpop.eup %3488 }
 0x163   : > { %v667_v39 = vmul.f32 %v3489_v38, %v637_v12  ;;  %v682_v43 = vadd.f32 %v3169_v41, %v674_v40 }
 0x165   : > { %v675_v42 = vmul.f32 %v3168_v37, %v667_v39 }
 0x167   : > { %v683_v44 = vadd.f32 %v3169_v41, %v675_v42 }
 0x169   : > { %v684_v45 = vpack.c.bf16 %v683_v44, %v682_v43 }
 0x16b   : > { %3299 = vmatmul.mubr.msk.bf16.vlgmr.msra.gmra.mrb[0].mxu1 %vm626_vm1, %v684_v45 }
 0x16c   : > { %3304 = vmatprep.mubr.msk.bf16.mxu1 %vm3579_vm2, %v3578_v17 }
 0x23e   : > { %v745_v47 = vpop.f32.mrb[0].mxu1 }
 0x23f   : > { %v3765_v48 = vadd.f32 %v3170_v46, %v745_v47  ;;  %v3300_v49 = vpop.f32.mrb[1].mxu1 }
 0x240   : > { %v748_v50 = vpop.f32.mrb[2].mxu1 }
 0x241   : > { %778 = vrot.lane.b32.xlu1 %v3765_v48, %s3580_s21  ;;  %772 = vrot.lane.b32.xlu0 %v3765_v48, %s3581_s24  ;;  %v3301_v51 = vpop.f32.mrb[3].mxu1  ;;  %v3769_v52 = vadd.f32 %v3170_v46, %v748_v50 }
 0x245   : > { %784 = vrot.lane.b32.xlu0 %v3765_v48, %s3582_s27  ;;  %774 = vrot.lane.b32.xlu1 %v3769_v52, %s3581_s24  ;;  %s3591_s24 = smov 48  }
 0x249   : > { %790 = vrot.lane.b32.xlu0 %v3765_v48, %s3583_s29  ;;  %780 = vrot.lane.b32.xlu1 %v3769_v52, %s3580_s21 }
 0x24d   : > { %754 = vrot.lane.b32.xlu0 %v3765_v48, %s3584_s16  ;;  %786 = vrot.lane.b32.xlu1 %v3769_v52, %s3582_s27  ;;  %s3592_s27 = smov 40  }
 0x251   : > { %760 = vrot.lane.b32.xlu0 %v3765_v48, %s3585_s2  ;;  %792 = vrot.lane.b32.xlu1 %v3769_v52, %s3583_s29 }
 0x255   : > { %766 = vrot.lane.b32.xlu0 %v3765_v48, %s3586_s19  ;;  %756 = vrot.lane.b32.xlu1 %v3769_v52, %s3584_s16  ;;  %s4280_s16 = scalar_lea.vmem %s4259_s5, %s3683_s15 }
 0x259   : > { %796 = vrot.lane.b32.xlu0 %v3765_v48, %s3587_s4  ;;  %762 = vrot.lane.b32.xlu1 %v3769_v52, %s3585_s2 }
 0x25d   : > { %768 = vrot.lane.b32.xlu1 %v3769_v52, %s3586_s19 }
 0x261   : > { %802 = vrot.lane.b32.xlu1 %v3765_v48, %s3588_s18 }
 0x265   : > { %798 = vrot.lane.b32.xlu1 %v3769_v52, %s3587_s4  ;;  %s4282_s4 = sld [smem:[#allocation10_spill]] (!%p3232_p5) }
 0x269   : > { %804 = vrot.lane.b32.xlu1 %v3769_v52, %s3588_s18 }
 0x2b3   : > { %v779_v56 = vpop.permute.xlu1 %778  ;;  %v773_v57 = vpop.permute.xlu0 %772 }
 0x2b7   : > { %v785_v62 = vpop.permute.xlu0 %784  ;;  %v775_v63 = vpop.permute.xlu1 %774 }
 0x2b8   : > { %v852_v2 = vcombine.low %v773_v57, %v785_v62  ;;  %v853_v3 = vcombine.high %v773_v57, %v785_v62 }
 0x2ba   : > { %v860_v9 = vrot.slane %v852_v2, %v3787_v1  ;;  %v867_v10 = vrot.slane %v853_v3, %v3787_v1 }
 0x2bb   : > { %v791_v4 = vpop.permute.xlu0 %790  ;;  %v781_v5 = vpop.permute.xlu1 %780 }
 0x2bc   : > { %v868_v6 = vcombine.low %v779_v56, %v791_v4  ;;  %v869_v7 = vcombine.high %v779_v56, %v791_v4 }
 0x2be   : > { %v876_v11 = vrot.slane %v868_v6, %v3787_v1  ;;  %v883_v12 = vrot.slane %v869_v7, %v3787_v1 }
 0x2bf   : > { %v755_v13 = vpop.permute.xlu0 %754  ;;  %v787_v14 = vpop.permute.xlu1 %786 }
 0x2c0   : > { %v916_v15 = vcombine.low %v860_v9, %v876_v11  ;;  %v917_v16 = vcombine.high %v860_v9, %v876_v11  ;;  %v932_v18 = vcombine.low %v867_v10, %v883_v12  ;;  %v933_v19 = vcombine.high %v867_v10, %v883_v12 }
 0x2c1   : > { %v1056_v20 = vcombine.low %v775_v63, %v787_v14  ;;  %v1057_v21 = vcombine.high %v775_v63, %v787_v14 }
 0x2c2   : > { %v924_v22 = vrot.slane %v916_v15, %v3789_v8  ;;  %v931_v23 = vrot.slane %v917_v16, %v3789_v8  ;;  %v940_v24 = vrot.slane %v932_v18, %v3789_v8  ;;  %v947_v25 = vrot.slane %v933_v19, %v3789_v8 }
 0x2c3   : > { %v1064_v26 = vrot.slane %v1056_v20, %v3787_v1  ;;  %v1071_v27 = vrot.slane %v1057_v21, %v3787_v1  ;;  %v761_v28 = vpop.permute.xlu0 %760  ;;  %v793_v29 = vpop.permute.xlu1 %792 }
 0x2c4   : > { %v3175_v30 = vcombine.low %v924_v22, %v931_v23  ;;  %v3177_v31 = vcombine.high %v924_v22, %v931_v23  ;;  %v3179_v32 = vcombine.low %v940_v24, %v947_v25  ;;  %v3181_v33 = vcombine.high %v940_v24, %v947_v25 }
 0x2c5   : > { %v820_v34 = vcombine.low %v3765_v48, %v761_v28  ;;  %v821_v35 = vcombine.high %v3765_v48, %v761_v28  ;;  %v1072_v36 = vcombine.low %v781_v5, %v793_v29  ;;  %v1073_v37 = vcombine.high %v781_v5, %v793_v29 }
 0x2c6   : > { %v3804_v38 = vrot.slane %v3175_v30, %v3787_v1  ;;  %v3807_v39 = vrot.slane %v3177_v31, %v3787_v1  ;;  %v3810_v40 = vrot.slane %v3179_v32, %v3787_v1  ;;  %v3813_v41 = vrot.slane %v3181_v33, %v3787_v1 }
 0x2c7   : > { %v828_v42 = vrot.slane %v820_v34, %v3787_v1  ;;  %v835_v43 = vrot.slane %v821_v35, %v3787_v1  ;;  %v1080_v44 = vrot.slane %v1072_v36, %v3787_v1  ;;  %v1087_v45 = vrot.slane %v1073_v37, %v3787_v1  ;;  %v767_v46 = vpop.permute.xlu0 %766  ;;  %v757_v47 = vpop.permute.xlu1 %756 }
 0x2c8   : > { %v836_v49 = vcombine.low %v755_v13, %v767_v46  ;;  %v837_v50 = vcombine.high %v755_v13, %v767_v46  ;;  %v1308_v51 = vcombine.low %v3804_v38, %v3807_v39  ;;  %v1340_v53 = vcombine.low %v3810_v40, %v3813_v41 }
 0x2c9   : > { %v1120_v54 = vcombine.low %v1064_v26, %v1080_v44  ;;  %v1121_v55 = vcombine.high %v1064_v26, %v1080_v44  ;;  %v1136_v56 = vcombine.low %v1071_v27, %v1087_v45  ;;  %v1137_v57 = vcombine.high %v1071_v27, %v1087_v45 }
 0x2ca   : > { %v844_v58 = vrot.slane %v836_v49, %v3787_v1  ;;  %v851_v59 = vrot.slane %v837_v50, %v3787_v1  ;;  %v3826_v60 = vrot.slane %v1308_v51, %v3789_v8  ;;  %v3829_v61 = vrot.slane %v1340_v53, %v3789_v8 }
 0x2cb   : > { %v1128_v62 = vrot.slane %v1120_v54, %v3789_v8  ;;  %v1135_v63 = vrot.slane %v1121_v55, %v3789_v8  ;;  %v1144_v0 = vrot.slane %v1136_v56, %v3789_v8  ;;  %v1151_v2 = vrot.slane %v1137_v57, %v3789_v8  ;;  %v763_v3 = vpop.permute.xlu1 %762 }
 0x2cc   : > { %v884_v4 = vcombine.low %v828_v42, %v844_v58  ;;  %v885_v5 = vcombine.high %v828_v42, %v844_v58  ;;  %v900_v6 = vcombine.low %v835_v43, %v851_v59  ;;  %v901_v7 = vcombine.high %v835_v43, %v851_v59 }
 0x2cd   : > { %v3183_v9 = vcombine.low %v1128_v62, %v1135_v63  ;;  %v3185_v10 = vcombine.high %v1128_v62, %v1135_v63  ;;  %v3187_v11 = vcombine.low %v1144_v0, %v1151_v2  ;;  %v3189_v12 = vcombine.high %v1144_v0, %v1151_v2 }
 0x2ce   : > { %v892_v13 = vrot.slane %v884_v4, %v3789_v8  ;;  %v899_v14 = vrot.slane %v885_v5, %v3789_v8  ;;  %v908_v15 = vrot.slane %v900_v6, %v3789_v8  ;;  %v915_v16 = vrot.slane %v901_v7, %v3789_v8 }
 0x2cf   : > { %v1024_v18 = vcombine.low %v3769_v52, %v763_v3  ;;  %v1025_v19 = vcombine.high %v3769_v52, %v763_v3  ;;  %v769_v20 = vpop.permute.xlu1 %768  ;;  %v1360_v21 = vcombine.low %v3826_v60, %v3829_v61  ;;  %v3844_v22 = vrot.slane %v3183_v9, %v3787_v1 }
 0x2d0   : > { %v3174_v23 = vcombine.low %v892_v13, %v899_v14  ;;  %v3176_v24 = vcombine.high %v892_v13, %v899_v14  ;;  %v3178_v25 = vcombine.low %v908_v15, %v915_v16  ;;  %v3180_v26 = vcombine.high %v908_v15, %v915_v16 }
 0x2d1   : > { %v1032_v27 = vrot.slane %v1024_v18, %v3787_v1  ;;  %v1039_v28 = vrot.slane %v1025_v19, %v3787_v1  ;;  %v1040_v29 = vcombine.low %v757_v47, %v769_v20  ;;  %v1041_v30 = vcombine.high %v757_v47, %v769_v20 }
 0x2d2   : > { %v3849_v31 = vrot.slane %v3174_v23, %v3787_v1  ;;  %v3852_v32 = vrot.slane %v3176_v24, %v3787_v1  ;;  %v3855_v33 = vrot.slane %v3178_v25, %v3787_v1  ;;  %v3858_v34 = vrot.slane %v3180_v26, %v3787_v1 }
 0x2d3   : > { %v1048_v35 = vrot.slane %v1040_v29, %v3787_v1  ;;  %v1055_v36 = vrot.slane %v1041_v30, %v3787_v1  ;;  %v1644_v37 = vpack.c.bf16 %v1360_v21, %v1360_v21  ;;  %v3863_v42 = vrot.slane %v3185_v10, %v3787_v1 }
 0x2d4   : > { %v1292_v43 = vcombine.low %v3849_v31, %v3852_v32  ;;  %v1324_v44 = vcombine.low %v3855_v33, %v3858_v34  ;;  %v1411_v51 = vrot.slane %v3187_v11, %v3787_v1  ;;  %v1427_v53 = vrot.slane %v3189_v12, %v3787_v1 }
 0x2d5   : > { %v1088_v45 = vcombine.low %v1032_v27, %v1048_v35  ;;  %v1089_v46 = vcombine.high %v1032_v27, %v1048_v35  ;;  %v1104_v47 = vcombine.low %v1039_v28, %v1055_v36  ;;  %v1105_v49 = vcombine.high %v1039_v28, %v1055_v36 }
 0x2d6   : > { %v1665_v50 = vsel %vm1660_vm7, %v1644_v37, 0  ;;  %v1444_v54 = vcombine.low %v3844_v22, %v3863_v42  ;;  %v1476_v62 = vcombine.low %v1411_v51, %v1427_v53  ;;  %v1300_v63 = vrot.slane %v1292_v43, %v3789_v8 }
 0x2d7   : > { %v1096_v55 = vrot.slane %v1088_v45, %v3789_v8  ;;  %v1103_v56 = vrot.slane %v1089_v46, %v3789_v8  ;;  %v1112_v57 = vrot.slane %v1104_v47, %v3789_v8  ;;  %v1119_v58 = vrot.slane %v1105_v49, %v3789_v8  ;;  %3303 = vmatpush3.bf16.xpose.msra.mxu1 %v1665_v50 }
 0x2d8   : > { %v1452_v59 = vrot.slane %v1444_v54, %v3789_v8  ;;  %3314 = vmatprep.subr.bf16.mxu1 %v3578_v17  ;;  %v1332_v0 = vrot.slane %v1324_v44, %v3789_v8  ;;  %v1484_v6 = vrot.slane %v1476_v62, %v3789_v8  ;;  %v1361_v9 = vcombine.high %v3826_v60, %v3829_v61 }
 0x2d9   : > { %v3182_v2 = vcombine.low %v1096_v55, %v1103_v56  ;;  %v3184_v3 = vcombine.high %v1096_v55, %v1103_v56  ;;  %v3186_v4 = vcombine.low %v1112_v57, %v1119_v58  ;;  %v3188_v5 = vcombine.high %v1112_v57, %v1119_v58 }
 0x2da   : > { %v1356_v7 = vcombine.low %v1300_v63, %v1332_v0  ;;  %v1496_v14 = vcombine.low %v1452_v59, %v1484_v6  ;;  %v1646_v16 = vpack.c.bf16 %v1361_v9, %v1361_v9  ;;  %v1357_v23 = vcombine.high %v1300_v63, %v1332_v0 }
 0x2db   : > { %v1372_v10 = vrot.slane %v3182_v2, %v3787_v1  ;;  %v1388_v11 = vrot.slane %v3184_v3, %v3787_v1  ;;  %v1404_v12 = vrot.slane %v3186_v4, %v3787_v1  ;;  %v1420_v13 = vrot.slane %v3188_v5, %v3787_v1 }
 0x2dc   : > { %v1636_v15 = vpack.c.bf16 %v1356_v7, %v1356_v7  ;;  %v1645_v20 = vpack.c.bf16 %v1496_v14, %v1496_v14  ;;  %v1757_v21 = vsel %vm1660_vm7, %v1646_v16, 0  ;;  %v1309_v60 = vcombine.high %v3804_v38, %v3807_v39 }
 0x2dd   : > { %v1428_v18 = vcombine.low %v1372_v10, %v1388_v11  ;;  %v1460_v19 = vcombine.low %v1404_v12, %v1420_v13  ;;  %v1341_v25 = vcombine.high %v3810_v40, %v3813_v41  ;;  %v1497_v27 = vcombine.high %v1452_v59, %v1484_v6 }
 0x2de   : > { %3305 = vmatmul.mubr.msk.bf16.vlgmr.msra.gmra.mrb[4].mxu1 %vm1660_vm7, %v1636_v15  ;;  %v1711_v26 = vsel %vm1660_vm7, %v1645_v20, 0  ;;  %v1323_v28 = vrot.slane %v1309_v60, %v3789_v8  ;;  %v1293_v38 = vcombine.high %v3849_v31, %v3852_v32  ;;  %v1325_v39 = vcombine.high %v3855_v33, %v3858_v34  ;;  %v618_v20 = vld [vmem:[%s4255_s1 + $0x10] sm:$0xff] }
 0x2df   : > { %3315 = vmatpush3.bf16.xpose.msra.mxu1 %v1757_v21  ;;  %3316 = vmatprep.mubr.msk.bf16.mxu1 %vm3579_vm2, %v3578_v17  ;;  %v1436_v61 = vrot.slane %v1428_v18, %v3789_v8  ;;  %v1468_v24 = vrot.slane %v1460_v19, %v3789_v8  ;;  %v1355_v30 = vrot.slane %v1341_v25, %v3789_v8 }
 0x2e0   : > { %3326 = vmatprep.subr.bf16.mxu1 %v3578_v17  ;;  %3309 = vmatpush3.bf16.xpose.msra.mxu0 %v1711_v26  ;;  %v1445_v40 = vcombine.high %v3844_v22, %v3863_v42  ;;  %v1477_v41 = vcombine.high %v1411_v51, %v1427_v53  ;;  %v1638_v35 = vpack.c.bf16 %v1357_v23, %v1357_v23 }
 0x2e1   : > { %v1492_v29 = vcombine.low %v1436_v61, %v1468_v24  ;;  %3320 = vmatprep.subr.bf16.mxu0 %v3578_v17  ;;  %v1362_v36 = vcombine.low %v1323_v28, %v1355_v30  ;;  %v1647_v43 = vpack.c.bf16 %v1497_v27, %v1497_v27  ;;  %v1307_v33 = vrot.slane %v1293_v38, %v3789_v8 }
 0x2e2   : > { %v1459_v44 = vrot.slane %v1445_v40, %v3789_v8  ;;  %v1491_v31 = vrot.slane %v1477_v41, %v3789_v8  ;;  %v1339_v34 = vrot.slane %v1325_v39, %v3789_v8  ;;  %v1363_v22 = vcombine.high %v1323_v28, %v1355_v30 }
 0x2e3   : > { %v1637_v37 = vpack.c.bf16 %v1492_v29, %v1492_v29  ;;  %v1648_v32 = vpack.c.bf16 %v1362_v36, %v1362_v36  ;;  %v1803_v42 = vsel %vm1660_vm7, %v1647_v43, 0  ;;  %v1429_v49 = vcombine.high %v1372_v10, %v1388_v11  ;;  %v616_v11 = vld [vmem:[%s4255_s1] sm:$0xff] }
 0x2e4   : > { %v1498_v46 = vcombine.low %v1459_v44, %v1491_v31  ;;  %v1358_v47 = vcombine.low %v1307_v33, %v1339_v34  ;;  %v1461_v50 = vcombine.high %v1404_v12, %v1420_v13  ;;  %v1493_v51 = vcombine.high %v1436_v61, %v1468_v24  ;;  %v617_v24 = vld [vmem:[%s4255_s1 + $0x8] sm:$0xff] }
 0x2e5   : > { %v1849_v45 = vsel %vm1660_vm7, %v1648_v32, 0  ;;  %v1650_v53 = vpack.c.bf16 %v1363_v22, %v1363_v22  ;;  %v1443_v57 = vrot.slane %v1429_v49, %v3789_v8  ;;  %v1499_v63 = vcombine.high %v1459_v44, %v1491_v31 }
 0x2e6   : > { %3317 = vmatmul.mubr.msk.bf16.vlgmr.msra.gmra.mrb[8].mxu1 %vm1660_vm7, %v1638_v35  ;;  %v1649_v54 = vpack.c.bf16 %v1498_v46, %v1498_v46  ;;  %v1640_v55 = vpack.c.bf16 %v1358_v47, %v1358_v47  ;;  %v1639_v56 = vpack.c.bf16 %v1493_v51, %v1493_v51  ;;  %v1475_v58 = vrot.slane %v1461_v50, %v3789_v8  ;;  %v622_v50 = vld [vmem:[%s4255_s1 + $0x30] sm:$0xff] }
 0x2e7   : > { %3328 = vmatprep.mubr.msk.bf16.mxu1 %vm3579_vm2, %v3578_v17  ;;  %3311 = vmatmul.mubr.msk.bf16.vlgmr.msra.gmra.mrb[0].mxu0 %vm1660_vm7, %v1637_v37  ;;  %v1941_v59 = vsel %vm1660_vm7, %v1650_v53, 0  ;;  %v1359_v0 = vcombine.high %v1307_v33, %v1339_v34  ;;  %v1651_v3 = vpack.c.bf16 %v1499_v63, %v1499_v63  ;;  %v619_v37 = vld [vmem:[%s4255_s1 + $0x18] sm:$0xff] }
 0x2e8   : > { %3327 = vmatpush3.bf16.xpose.msra.mxu1 %v1849_v45  ;;  %3321 = vmatpush3.bf16.xpose.msra.mxu0 %v1803_v42  ;;  %v1895_v62 = vsel %vm1660_vm7, %v1649_v54, 0  ;;  %v1494_v2 = vcombine.low %v1443_v57, %v1475_v58  ;;  %v1495_v7 = vcombine.high %v1443_v57, %v1475_v58  ;;  %v620_v45 = vld [vmem:[%s4255_s1 + $0x20] sm:$0xff] }
 0x2e9   : > { %3322 = vmatprep.mubr.msk.bf16.mxu0 %vm3579_vm2, %v3578_v17  ;;  %3332 = vmatprep.subr.bf16.mxu0 %v3578_v17  ;;  %v1642_v4 = vpack.c.bf16 %v1359_v0, %v1359_v0  ;;  %v1987_v6 = vsel %vm1660_vm7, %v1651_v3, 0 }
 0x2ea   : > { %3338 = vmatprep.subr.bf16.mxu1 %v3578_v17  ;;  %v1641_v5 = vpack.c.bf16 %v1494_v2, %v1494_v2  ;;  %v1643_v9 = vpack.c.bf16 %v1495_v7, %v1495_v7  ;;  %v623_v7 = vld [vmem:[%s4255_s1 + $0x38] sm:$0xff] }
 0x2ef   : > { %3329 = vmatmul.mubr.msk.bf16.vlgmr.msra.gmra.mrb[12].mxu1 %vm1660_vm7, %v1640_v55  ;;  %3323 = vmatmul.mubr.msk.bf16.vlgmr.msra.gmra.mrb[4].mxu0 %vm1660_vm7, %v1639_v56  ;;  %v621_v55 = vld [vmem:[%s4255_s1 + $0x28] sm:$0xff] }
 0x2f0   : > { %3339 = vmatpush3.bf16.xpose.msra.mxu1 %v1941_v59  ;;  %3333 = vmatpush3.bf16.xpose.msra.mxu0 %v1895_v62 }
 0x2f1   : > { %3334 = vmatprep.mubr.msk.bf16.mxu0 %vm3579_vm2, %v3578_v17  ;;  %3340 = vmatprep.mubr.msk.bf16.mxu1 %vm3579_vm2, %v3578_v17 }
 0x2f2   : > { %3344 = vmatprep.subr.bf16.mxu0 %v3578_v17  ;;  %3350 = vmatprep.subr.bf16.mxu1 %v3578_v17 }
 0x2f7   : > { %3341 = vmatmul.mubr.msk.bf16.vlgmr.msra.gmra.mrb[16].mxu1 %vm1660_vm7, %v1642_v4  ;;  %3335 = vmatmul.mubr.msk.bf16.vlgmr.msra.gmra.mrb[8].mxu0 %vm1660_vm7, %v1641_v5 }
 0x2f8   : > { %3352 = vmatprep.mubr.msk.bf16.mxu1 %vm3579_vm2, %v3578_v17  ;;  %3345 = vmatpush3.bf16.xpose.msra.mxu0 %v1987_v6 }
 0x2f9   : > { %3346 = vmatprep.mubr.msk.bf16.mxu0 %vm3579_vm2, %v3578_v17  ;;  %3356 = vmatprep.subr.bf16.mxu0 %v3578_v17 }
 0x2ff   : > { %3347 = vmatmul.mubr.msk.bf16.vlgmr.msra.gmra.mrb[12].mxu0 %vm1660_vm7, %v1643_v9 }
 0x300   : > { %3358 = vmatprep.mubr.msk.bf16.mxu0 %vm3579_vm2, %v3578_v17 }
 0x3b1   : > { %v1701_v10 = vpop.f32.mrb[4].mxu1 }
 0x3b2   : > { %v2029_v12 = vmul.f32 0.35355338, %v1701_v10  ;;  %v3306_v13 = vpop.f32.mrb[5].mxu1 }
 0x3b3   : > { %v1704_v14 = vpop.f32.mrb[6].mxu1 }
 0x3b4   : > { %v3307_v15 = vpop.f32.mrb[7].mxu1  ;;  %v3950_v16 = vadd.f32 %v2029_v12, %v616_v11 }
 0x3b5   : > { %v3996_v15 = vpop.permute.xlu1 %802 }
 0x3b6   : > { %v2045_v18 = vsel %vm1660_vm7, %v3950_v16, -inf }
 0x3b7   : > { %2046 = vmax.xlane.f32.xlu0 %v2045_v18  ;;  %v3998_v18 = vpop.permute.xlu0 %796 }
 0x3b9   : > { %v1793_v19 = vpop.f32.mrb[8].mxu1 }
 0x3ba   : > { %v2031_v21 = vmul.f32 0.35355338, %v1793_v19  ;;  %v3318_v23 = vpop.f32.mrb[9].mxu1  ;;  %v1747_v60 = vpop.f32.mrb[0].mxu0 }
 0x3bb   : > { %v1796_v61 = vpop.f32.mrb[10].mxu1  ;;  %v2030_v25 = vmul.f32 0.35355338, %v1747_v60  ;;  %v3312_v26 = vpop.f32.mrb[1].mxu0 }
 0x3bc   : > { %v3319_v27 = vpop.f32.mrb[11].mxu1  ;;  %v3960_v28 = vadd.f32 %v2031_v21, %v618_v20  ;;  %v1750_v38 = vpop.f32.mrb[2].mxu0 }
 0x3bd   : > { %v3313_v39 = vpop.f32.mrb[3].mxu0  ;;  %v3962_v29 = vadd.f32 %v2030_v25, %v617_v24  ;;  %v4000_v19 = vpop.permute.xlu1 %798 }
 0x3be   : > { %v2051_v30 = vsel %vm1660_vm7, %v3960_v28, -inf }
 0x3bf   : > { %2052 = vmax.xlane.f32.xlu0 %v2051_v30  ;;  %v2048_v40 = vsel %vm1660_vm7, %v3962_v29, -inf }
 0x3c0   : > { %2049 = vmax.xlane.f32.xlu1 %v2048_v40 }
 0x3c1   : > { %v4003_v60 = vpop.permute.xlu1 %804 }
 0x3c2   : > { %v1885_v41 = vpop.f32.mrb[12].mxu1  ;;  %v1839_v35 = vpop.f32.mrb[4].mxu0 }
 0x3c3   : > { %v3330_v36 = vpop.f32.mrb[13].mxu1  ;;  %v2032_v43 = vmul.f32 0.35355338, %v1839_v35  ;;  %v2033_v44 = vmul.f32 0.35355338, %v1885_v41  ;;  %v3324_v31 = vpop.f32.mrb[5].mxu0 }
 0x3c4   : > { %v1888_v32 = vpop.f32.mrb[14].mxu1  ;;  %v1842_v33 = vpop.f32.mrb[6].mxu0 }
 0x3c5   : > { %v3331_v34 = vpop.f32.mrb[15].mxu1  ;;  %v3325_v22 = vpop.f32.mrb[7].mxu0  ;;  %v3974_v42 = vadd.f32 %v2032_v43, %v619_v37  ;;  %v3978_v47 = vadd.f32 %v2033_v44, %v620_v45 }
 0x3c7   : > { %v2054_v46 = vsel %vm1660_vm7, %v3974_v42, -inf  ;;  %v2057_v58 = vsel %vm1660_vm7, %v3978_v47, -inf }
 0x3c8   : > { %2055 = vmax.xlane.f32.xlu0 %v2054_v46 }
 0x3ca   : > { %v1977_v49 = vpop.f32.mrb[16].mxu1  ;;  %v1931_v51 = vpop.f32.mrb[8].mxu0 }
 0x3cb   : > { %v2035_v53 = vmul.f32 0.35355338, %v1977_v49  ;;  %v3342_v54 = vpop.f32.mrb[17].mxu1  ;;  %v2034_v56 = vmul.f32 0.35355338, %v1931_v51  ;;  %v3336_v57 = vpop.f32.mrb[9].mxu0 }
 0x3cc   : > { %v1980_v59 = vpop.f32.mrb[18].mxu1  ;;  %v1934_v62 = vpop.f32.mrb[10].mxu0  ;;  %2058 = vmax.xlane.f32.xlu0 %v2057_v58 }
 0x3cd   : > { %v3343_v63 = vpop.f32.mrb[19].mxu1  ;;  %v2043_v0 = vadd.f32 %v2035_v53, %v622_v50  ;;  %v3337_v2 = vpop.f32.mrb[11].mxu0  ;;  %v2042_v3 = vadd.f32 %v2034_v56, %v621_v55 }
 0x3cf   : > { %v2063_v4 = vsel %vm1660_vm7, %v2043_v0, -inf  ;;  %v2060_v5 = vsel %vm1660_vm7, %v2042_v3, -inf }
 0x3d0   : > { %2061 = vmax.xlane.f32.xlu1 %v2060_v5  ;;  %2064 = vmax.xlane.f32.xlu0 %v2063_v4 }
 0x3d2   : > { %v2023_v6 = vpop.f32.mrb[12].mxu0 }
 0x3d3   : > { %v2036_v9 = vmul.f32 0.35355338, %v2023_v6  ;;  %v3348_v10 = vpop.f32.mrb[13].mxu0 }
 0x3d4   : > { %v2026_v11 = vpop.f32.mrb[14].mxu0 }
 0x3d5   : > { %v3349_v12 = vpop.f32.mrb[15].mxu0  ;;  %v2044_v13 = vadd.f32 %v2036_v9, %v623_v7 }
 0x3d7   : > { %v2066_v14 = vsel %vm1660_vm7, %v2044_v13, -inf }
 0x3d8   : > { %2067 = vmax.xlane.f32.xlu1 %v2066_v14 }
 0x3e6   : > { %808 = vrot.lane.b32.xlu0 %v3765_v48, %s3591_s24 }
 0x3e9   : > { %810 = vrot.lane.b32.xlu1 %v3769_v52, %s3591_s24 }
 0x444   : > { %v2047_v20 = vpop.xlane.xlu0 %2046 }
 0x445   : > { %v2069_v21 = vsub.f32 %v3950_v16, %v2047_v20 }
 0x447   : > { %v2077_v23 = vmul.f32 1.442695, %v2069_v21 }
 0x449   : > { %3490 = vpow2.f32 %v2077_v23 }
 0x44c   : > { %v2053_v39 = vpop.xlane.xlu0 %2052 }
 0x44d   : > { %v2050_v61 = vpop.xlane.xlu1 %2049 }
 0x44e   : > { %v2070_v24 = vsub.f32 %v3962_v29, %v2050_v61  ;;  %v2071_v29 = vsub.f32 %v3960_v28, %v2053_v39 }
 0x450   : > { %v2079_v25 = vmul.f32 1.442695, %v2070_v24  ;;  %v2081_v41 = vmul.f32 1.442695, %v2071_v29 }
 0x452   : > { %3492 = vpow2.f32 %v2079_v25 }
 0x453   : > { %v4006_v26 = vpop.eup %3490  ;;  %3494 = vpow2.f32 %v2081_v41 }
 0x454   : > { %v2093_v27 = vsel %vm1660_vm7, %v4006_v26, 0.0 }
 0x455   : > { %2094 = vadd.xlane.f32.xlu0 %v2093_v27  ;;  %v2056_v30 = vpop.xlane.xlu0 %2055 }
 0x456   : > { %v2072_v31 = vsub.f32 %v3974_v42, %v2056_v30 }
 0x458   : > { %v2083_v34 = vmul.f32 1.442695, %v2072_v31 }
 0x459   : > { %v2059_v40 = vpop.xlane.xlu0 %2058 }
 0x45a   : > { %v2073_v35 = vsub.f32 %v3978_v47, %v2059_v40 }
 0x45c   : > { %v4010_v38 = vpop.eup %3492  ;;  %v2085_v37 = vmul.f32 1.442695, %v2073_v35 }
 0x45d   : > { %v2096_v16 = vsel %vm1660_vm7, %v4010_v38, 0.0  ;;  %v2062_v36 = vpop.xlane.xlu1 %2061  ;;  %v2065_v44 = vpop.xlane.xlu0 %2064 }
 0x45e   : > { %2097 = vadd.xlane.f32.xlu1 %v2096_v16  ;;  %v2074_v43 = vsub.f32 %v2042_v3, %v2062_v36  ;;  %3496 = vpow2.f32 %v2085_v37  ;;  %v4019_v28 = vpop.eup %3494 }
 0x45f   : > { %v2099_v46 = vsel %vm1660_vm7, %v4019_v28, 0.0 }
 0x460   : > { %v2087_v33 = vmul.f32 1.442695, %v2074_v43 }
 0x461   : > { %v809_v58 = vpop.permute.xlu0 %808 }
 0x462   : > { %3498 = vpow2.f32 %v2087_v33  ;;  %v956_v62 = vcombine.low %v3998_v18, %v809_v58  ;;  %v957_v63 = vcombine.high %v3998_v18, %v809_v58 }
 0x463   : > { %3500 = vpow2.f32 %v2083_v34 }
 0x464   : > { %v964_v5 = vrot.slane %v956_v62, %v3787_v1  ;;  %v971_v6 = vrot.slane %v957_v63, %v3787_v1 }
 0x465   : > { %v2068_v32 = vpop.xlane.xlu1 %2067 }
 0x466   : > { %v2076_v45 = vsub.f32 %v2044_v13, %v2068_v32 }
 0x468   : > { %v2091_v22 = vmul.f32 1.442695, %v2076_v45  ;;  %v4023_v47 = vpop.eup %3496 }
 0x469   : > { %v2105_v42 = vsel %vm1660_vm7, %v4023_v47, 0.0  ;;  %v811_v4 = vpop.permute.xlu1 %810 }
 0x46a   : > { %v1160_v27 = vcombine.low %v4000_v19, %v811_v4  ;;  %v1161_v16 = vcombine.high %v4000_v19, %v811_v4 }
 0x46b   : > { %814 = vrot.lane.b32.xlu0 %v3765_v48, %s3592_s27  ;;  %v2075_v48 = vsub.f32 %v2043_v0, %v2065_v44 }
 0x46c   : > { %v4027_v49 = vpop.eup %3498  ;;  %v1168_v43 = vrot.slane %v1160_v27, %v3787_v1  ;;  %v1175_v44 = vrot.slane %v1161_v16, %v3787_v1 }
 0x46d   : > { %v4029_v50 = vpop.eup %3500  ;;  %v2108_v51 = vsel %vm1660_vm7, %v4027_v49, 0.0 }
 0x46e   : > { %v2102_v54 = vsel %vm1660_vm7, %v4029_v50, 0.0 }
 0x46f   : > { %816 = vrot.lane.b32.xlu1 %v3769_v52, %s3592_s27  ;;  %v2089_v52 = vmul.f32 1.442695, %v2075_v48 }
 0x471   : > { %3502 = vpow2.f32 %v2089_v52 }
 0x472   : > { %3504 = vpow2.f32 %v2091_v22 }
 0x47b   : > { %v4033_v53 = vpop.eup %3502 }
 0x47c   : > { %v4037_v55 = vpop.eup %3504  ;;  %v2111_v56 = vsel %vm1660_vm7, %v4033_v53, 0.0 }
 0x47d   : > { %v2114_v57 = vsel %vm1660_vm7, %v4037_v55, 0.0 }
 0x48a   : > { %2100 = vadd.xlane.f32.xlu0 %v2099_v46 }
 0x48e   : > { %2106 = vadd.xlane.f32.xlu0 %v2105_v42 }
 0x492   : > { %2109 = vadd.xlane.f32.xlu0 %v2108_v51 }
 0x493   : > { %2103 = vadd.xlane.f32.xlu1 %v2102_v54 }
 0x496   : > { %2112 = vadd.xlane.f32.xlu0 %v2111_v56 }
 0x497   : > { %2115 = vadd.xlane.f32.xlu1 %v2114_v57 }
 0x4e2   : > { %v2095_v59 = vpop.xlane.xlu0 %2094 }
 0x4e3   : > { %3506 = vrcp.f32 %v2095_v59 }
 0x4e6   : > { %v815_v0 = vpop.permute.xlu0 %814 }
 0x4e7   : > { %v972_v2 = vcombine.low %v3996_v15, %v815_v0  ;;  %v973_v3 = vcombine.high %v3996_v15, %v815_v0 }
 0x4e9   : > { %v980_v7 = vrot.slane %v972_v2, %v3787_v1  ;;  %v987_v9 = vrot.slane %v973_v3, %v3787_v1 }
 0x4eb   : > { %v988_v10 = vcombine.low %v964_v5, %v980_v7  ;;  %v989_v11 = vcombine.high %v964_v5, %v980_v7  ;;  %v1004_v12 = vcombine.low %v971_v6, %v987_v9  ;;  %v1005_v13 = vcombine.high %v971_v6, %v987_v9  ;;  %v2098_v14 = vpop.xlane.xlu1 %2097 }
 0x4ec   : > { %3508 = vrcp.f32 %v2098_v14 }
 0x4ed   : > { %v996_v18 = vrot.slane %v988_v10, %v3789_v8  ;;  %v1003_v20 = vrot.slane %v989_v11, %v3789_v8  ;;  %v1012_v15 = vrot.slane %v1004_v12, %v3789_v8  ;;  %v1019_v21 = vrot.slane %v1005_v13, %v3789_v8  ;;  %v3507_v34 = vpop.eup %3506 }
 0x4ee   : > { %v2125_v58 = vmul.f32 %v3507_v34, %v4006_v26 }
 0x4ef   : > { %v1500_v23 = vcombine.low %v996_v18, %v1003_v20  ;;  %v3190_v61 = vcombine.high %v996_v18, %v1003_v20  ;;  %v1516_v24 = vcombine.low %v1012_v15, %v1019_v21  ;;  %v3191_v25 = vcombine.high %v1012_v15, %v1019_v21  ;;  %v817_v39 = vpop.permute.xlu1 %816 }
 0x4f0   : > { %v1176_v35 = vcombine.low %v4003_v60, %v817_v39  ;;  %v1177_v36 = vcombine.high %v4003_v60, %v817_v39  ;;  %v2133_v10 = vpack.c.bf16 %v2125_v58, %v2125_v58 }
 0x4f1   : > { %v4058_v30 = vrot.slane %v1500_v23, %v3787_v1  ;;  %v4061_v29 = vrot.slane %v3190_v61, %v3787_v1  ;;  %v4064_v40 = vrot.slane %v1516_v24, %v3787_v1  ;;  %v4067_v41 = vrot.slane %v3191_v25, %v3787_v1 }
 0x4f2   : > { %v1184_v31 = vrot.slane %v1176_v35, %v3787_v1  ;;  %v1191_v32 = vrot.slane %v1177_v36, %v3787_v1 }
 0x4f3   : > { %v1532_v19 = vcombine.low %v4058_v30, %v4061_v29  ;;  %v1548_v37 = vcombine.low %v4064_v40, %v4067_v41  ;;  %v1549_v16 = vcombine.high %v4064_v40, %v4067_v41 }
 0x4f4   : > { %v1192_v60 = vcombine.low %v1168_v43, %v1184_v31  ;;  %v1193_v45 = vcombine.high %v1168_v43, %v1184_v31  ;;  %v1208_v52 = vcombine.low %v1175_v44, %v1191_v32  ;;  %v1209_v22 = vcombine.high %v1175_v44, %v1191_v32 }
 0x4f5   : > { %v1540_v33 = vrot.slane %v1532_v19, %v3789_v8  ;;  %v1556_v48 = vrot.slane %v1548_v37, %v3789_v8  ;;  %v1563_v36 = vrot.slane %v1549_v16, %v3789_v8 }
 0x4f6   : > { %v1200_v51 = vrot.slane %v1192_v60, %v3789_v8  ;;  %v1207_v54 = vrot.slane %v1193_v45, %v3789_v8  ;;  %v1216_v56 = vrot.slane %v1208_v52, %v3789_v8  ;;  %v1223_v57 = vrot.slane %v1209_v22, %v3789_v8  ;;  %v3509_v18 = vpop.eup %3508 }
 0x4f7   : > { %v1564_v46 = vcombine.low %v1540_v33, %v1556_v48  ;;  %v1565_v42 = vcombine.high %v1540_v33, %v1556_v48  ;;  %v2126_v15 = vmul.f32 %v3509_v18, %v4010_v38  ;;  %v1533_v38 = vcombine.high %v4058_v30, %v4061_v29 }
 0x4f8   : > { %v1568_v62 = vcombine.low %v1200_v51, %v1207_v54  ;;  %v3192_v63 = vcombine.high %v1200_v51, %v1207_v54  ;;  %v1584_v0 = vcombine.low %v1216_v56, %v1223_v57  ;;  %v3193_v2 = vcombine.high %v1216_v56, %v1223_v57 }
 0x4f9   : > { %v1652_v59 = vpack.c.bf16 %v1564_v46, %v1564_v46  ;;  %v1654_v4 = vpack.c.bf16 %v1565_v42, %v1565_v42  ;;  %v2134_v24 = vpack.c.bf16 %v2126_v15, %v2126_v15  ;;  %v1547_v35 = vrot.slane %v1533_v38, %v3789_v8  ;;  %v3213_v38 = vld [vmem:[%s3698_s25 + $0x8] sm:$0xf] }
 0x4fa   : > { %v1575_v5 = vrot.slane %v1568_v62, %v3787_v1  ;;  %v1583_v6 = vrot.slane %v3192_v63, %v3787_v1  ;;  %v1591_v7 = vrot.slane %v1584_v0, %v3787_v1  ;;  %v1599_v9 = vrot.slane %v3193_v2, %v3787_v1 }
 0x4fb   : > { %v2146_v3 = vsel %vm2144_vm8, %v1652_v59, 0  ;;  %v2238_v12 = vsel %vm2144_vm8, %v1654_v4, 0  ;;  %v1566_v37 = vcombine.low %v1547_v35, %v1563_v36  ;;  %v1567_v45 = vcombine.high %v1547_v35, %v1563_v36 }
 0x4fc   : > { %3351 = vmatpush3.bf16.msra.mxu1 %v2146_v3  ;;  %v1600_v26 = vcombine.low %v1575_v5, %v1583_v6  ;;  %v1616_v11 = vcombine.low %v1591_v7, %v1599_v9  ;;  %v1601_v44 = vcombine.high %v1575_v5, %v1583_v6  ;;  %v1617_v31 = vcombine.high %v1591_v7, %v1599_v9  ;;  %v2511_v6 = vld [vmem:[%s3698_s25] sm:$0xf]  ;;  %v3210_v9 = vld [vmem:[%s3698_s25 + $0x4] sm:$0xf] }
 0x4fd   : > { %3362 = vmatprep.subr.bf16.mxu1 %v3578_v17  ;;  %v1656_v29 = vpack.c.bf16 %v1566_v37, %v1566_v37  ;;  %v1658_v46 = vpack.c.bf16 %v1567_v45, %v1567_v45  ;;  %v2566_v7 = vsel %vm2144_vm8, %v2511_v6, 0  ;;  %v3217_v6 = vld [vmem:[%s4280_s16] ss:$0 sm:$0xff] }
 0x4fe   : > { %v1608_v13 = vrot.slane %v1600_v26, %v3789_v8  ;;  %v1624_v14 = vrot.slane %v1616_v11, %v3789_v8  ;;  %v1615_v41 = vrot.slane %v1601_v44, %v3789_v8  ;;  %v1631_v48 = vrot.slane %v1617_v31, %v3789_v8 }
 0x4ff   : > { %3353 = vmatmul.mubr.msk.bf16.vlgmr.msra.gmra.mrb[20].mxu1 %vm1660_vm7, %v2133_v10  ;;  %v2330_v60 = vsel %vm2144_vm8, %v1656_v29, 0  ;;  %v2422_v58 = vsel %vm2144_vm8, %v1658_v46, 0  ;;  %v2519_v10 = vsel %vm2144_vm8, %v3210_v9, 0  ;;  %v3530_v9 = vld [vmem:[#allocation2] sm:$0xff] }
 0x500   : > { %3363 = vmatpush3.bf16.msra.mxu1 %v2238_v12  ;;  %3364 = vmatprep.mubr.msk.bf16.mxu1 %vm3579_vm2, %v3578_v17  ;;  %v1632_v1 = vcombine.low %v1608_v13, %v1624_v14  ;;  %v1633_v20 = vcombine.high %v1608_v13, %v1624_v14  ;;  %v1634_v52 = vcombine.low %v1615_v41, %v1631_v48  ;;  %v3215_v13 = vld [vmem:[%s3698_s25 + $0xc] sm:$0xf] }
 0x501   : > { %3374 = vmatprep.subr.bf16.mxu1 %v3578_v17  ;;  %v1635_v62 = vcombine.high %v1615_v41, %v1631_v48 }
 0x502   : > { %v1653_v21 = vpack.c.bf16 %v1632_v1, %v1632_v1  ;;  %v1655_v61 = vpack.c.bf16 %v1633_v20, %v1633_v20  ;;  %v1657_v54 = vpack.c.bf16 %v1634_v52, %v1634_v52  ;;  %v2668_v20 = vsel %vm2144_vm8, %v3215_v13, 0 }
 0x503   : > { %v1659_v2 = vpack.c.bf16 %v1635_v62, %v1635_v62 }
 0x504   : > { %v2192_v23 = vsel %vm2144_vm8, %v1653_v21, 0  ;;  %v2284_v25 = vsel %vm2144_vm8, %v1655_v61, 0 }
 0x505   : > { %3357 = vmatpush3.bf16.msra.mxu0 %v2192_v23  ;;  %v2468_v4 = vsel %vm2144_vm8, %v1659_v2, 0 }
 0x506   : > { %3368 = vmatprep.subr.bf16.mxu0 %v3578_v17 }
 0x508   : > { %3359 = vmatmul.mubr.msk.bf16.vlgmr.msra.gmra.mrb[16].mxu0 %vm1660_vm7, %v2134_v24 }
 0x509   : > { %3369 = vmatpush3.bf16.msra.mxu0 %v2284_v25  ;;  %3370 = vmatprep.mubr.msk.bf16.mxu0 %vm3579_vm2, %v3578_v17 }
 0x50a   : > { %3380 = vmatprep.subr.bf16.mxu0 %v3578_v17 }
 0x517   : > { %v2101_v27 = vpop.xlane.xlu0 %2100 }
 0x518   : > { %3510 = vrcp.f32 %v2101_v27 }
 0x51b   : > { %v2107_v39 = vpop.xlane.xlu0 %2106 }
 0x51c   : > { %3512 = vrcp.f32 %v2107_v39 }
 0x51f   : > { %v2110_v19 = vpop.xlane.xlu0 %2109 }
 0x520   : > { %v2104_v43 = vpop.xlane.xlu1 %2103 }
 0x521   : > { %3514 = vrcp.f32 %v2104_v43  ;;  %v2616_v43 = vsel %vm2144_vm8, %v3213_v38, 0 }
 0x522   : > { %v3511_v32 = vpop.eup %3510 }
 0x523   : > { %v2127_v33 = vmul.f32 %v3511_v32, %v4019_v28  ;;  %v2113_v30 = vpop.xlane.xlu0 %2112 }
 0x524   : > { %3516 = vrcp.f32 %v2113_v30  ;;  %v2116_v22 = vpop.xlane.xlu1 %2115 }
 0x525   : > { %v2135_v40 = vpack.c.bf16 %v2127_v33, %v2127_v33  ;;  %3518 = vrcp.f32 %v2110_v19 }
 0x526   : > { %v3513_v34 = vpop.eup %3512  ;;  %3520 = vrcp.f32 %v2116_v22 }
 0x527   : > { %3365 = vmatmul.mubr.msk.bf16.vlgmr.msra.gmra.mrb[24].mxu1 %vm1660_vm7, %v2135_v40  ;;  %v2129_v28 = vmul.f32 %v3513_v34, %v4023_v47 }
 0x528   : > { %3375 = vmatpush3.bf16.msra.mxu1 %v2330_v60  ;;  %3376 = vmatprep.mubr.msk.bf16.mxu1 %vm3579_vm2, %v3578_v17 }
 0x529   : > { %3386 = vmatprep.subr.bf16.mxu1 %v3578_v17  ;;  %v2137_v51 = vpack.c.bf16 %v2129_v28, %v2129_v28 }
 0x52b   : > { %v3515_v42 = vpop.eup %3514 }
 0x52c   : > { %v2128_v8 = vmul.f32 %v3515_v42, %v4029_v50  ;;  %v2376_v50 = vsel %vm2144_vm8, %v1657_v54, 0 }
 0x52e   : > { %v3517_v56 = vpop.eup %3516  ;;  %v2136_v57 = vpack.c.bf16 %v2128_v8, %v2128_v8 }
 0x52f   : > { %3377 = vmatmul.mubr.msk.bf16.vlgmr.msra.gmra.mrb[28].mxu1 %vm1660_vm7, %v2137_v51  ;;  %v3519_v59 = vpop.eup %3518  ;;  %v2131_v47 = vmul.f32 %v3517_v56, %v4033_v53 }
 0x530   : > { %3387 = vmatpush3.bf16.msra.mxu1 %v2422_v58  ;;  %3388 = vmatprep.mubr.msk.bf16.mxu1 %vm3579_vm2, %v3578_v17  ;;  %v2130_v63 = vmul.f32 %v3519_v59, %v4027_v49  ;;  %v3521_v53 = vpop.eup %3520 }
 0x531   : > { %3371 = vmatmul.mubr.msk.bf16.vlgmr.msra.gmra.mrb[20].mxu0 %vm1660_vm7, %v2136_v57  ;;  %3398 = vmatprep.subr.bf16.mxu1 %v3578_v17  ;;  %v2139_v0 = vpack.c.bf16 %v2131_v47, %v2131_v47  ;;  %v2132_v49 = vmul.f32 %v3521_v53, %v4037_v55 }
 0x532   : > { %3381 = vmatpush3.bf16.msra.mxu0 %v2376_v50  ;;  %3382 = vmatprep.mubr.msk.bf16.mxu0 %vm3579_vm2, %v3578_v17  ;;  %v2138_v3 = vpack.c.bf16 %v2130_v63, %v2130_v63 }
 0x533   : > { %3392 = vmatprep.subr.bf16.mxu0 %v3578_v17  ;;  %v2140_v5 = vpack.c.bf16 %v2132_v49, %v2132_v49 }
 0x537   : > { %3389 = vmatmul.mubr.msk.bf16.vlgmr.msra.gmra.mrb[32].mxu1 %vm1660_vm7, %v2139_v0 }
 0x538   : > { %3400 = vmatprep.mubr.msk.bf16.mxu1 %vm3579_vm2, %v3578_v17  ;;  %3399 = vmatpush3.bf16.msra.mxu1 %v2519_v10 }
 0x539   : > { %3383 = vmatmul.mubr.msk.bf16.vlgmr.msra.gmra.mrb[24].mxu0 %vm1660_vm7, %v2138_v3  ;;  %3410 = vmatprep.subr.bf16.mxu1 %v3578_v17 }
 0x53a   : > { %3393 = vmatpush3.bf16.msra.mxu0 %v2468_v4  ;;  %3394 = vmatprep.mubr.msk.bf16.mxu0 %vm3579_vm2, %v3578_v17 }
 0x53b   : > { %3404 = vmatprep.subr.bf16.mxu0 %v3578_v17 }
 0x541   : > { %3395 = vmatmul.mubr.msk.bf16.vlgmr.msra.gmra.mrb[28].mxu0 %vm1660_vm7, %v2140_v5 }
 0x542   : > { %3406 = vmatprep.mubr.msk.bf16.mxu0 %vm3579_vm2, %v3578_v17  ;;  %3405 = vmatpush3.bf16.msra.mxu0 %v2566_v7 }
 0x543   : > { %3416 = vmatprep.subr.bf16.mxu0 %v3578_v17 }
 0x5d2   : > { %v2182_v55 = vpop.f32.mrb[20].mxu1 }
 0x5d3   : > { %v3354_v26 = vpop.f32.mrb[21].mxu1 }
 0x5d4   : > { %v2185_v11 = vpop.f32.mrb[22].mxu1 }
 0x5d5   : > { %v3355_v12 = vpop.f32.mrb[23].mxu1 }
 0x5d6   : > { %v3531_v12 = vld [vmem:[#allocation2 + $0x8] sm:$0xff] }
 0x5db   : > { %v2228_v14 = vpop.f32.mrb[16].mxu0 }
 0x5dc   : > { %v2510_v18 = vpack.c.bf16 %v2228_v14, %v2182_v55  ;;  %v3360_v1 = vpop.f32.mrb[17].mxu0 }
 0x5dd   : > { %v2231_v15 = vpop.f32.mrb[18].mxu0 }
 0x5de   : > { %v3361_v21 = vpop.f32.mrb[19].mxu0  ;;  %3407 = vmatmul.mubr.msk.bf16.vlgmr.msra.gmra.mrb[32].mxu0 %vm1660_vm7, %v2510_v18 }
 0x5df   : > { %3417 = vmatpush3.bf16.msra.mxu0 %v2668_v20  ;;  %3418 = vmatprep.mubr.msk.bf16.mxu0 %vm3579_vm2, %v3578_v17 }
 0x5e0   : > { %3430 = vmatprep.subr.bf16.mxu0 %v3578_v17 }
 0x5fa   : > { %v2274_v23 = vpop.f32.mrb[24].mxu1 }
 0x5fb   : > { %v3366_v61 = vpop.f32.mrb[25].mxu1 }
 0x5fc   : > { %v2277_v24 = vpop.f32.mrb[26].mxu1 }
 0x5fd   : > { %v3367_v25 = vpop.f32.mrb[27].mxu1 }
 0x602   : > { %v2366_v27 = vpop.f32.mrb[28].mxu1 }
 0x603   : > { %v3378_v16 = vpop.f32.mrb[29].mxu1 }
 0x604   : > { %v2320_v39 = vpop.f32.mrb[20].mxu0  ;;  %v2369_v35 = vpop.f32.mrb[30].mxu1 }
 0x605   : > { %v2512_v36 = vpack.c.bf16 %v2320_v39, %v2274_v23  ;;  %v3372_v19 = vpop.f32.mrb[21].mxu0  ;;  %v3379_v37 = vpop.f32.mrb[31].mxu1  ;;  %v3476_v39 = vld [vmem:[%s3707_s13] sm:$0xff]   ;;  %v3477_v35 = vld [vmem:[%s3707_s13 + $0x8] sm:$0xff]  }
 0x606   : > { %v2323_v44 = vpop.f32.mrb[22].mxu0  ;;  %v3479_v19 = vld [vmem:[%s3717_s23 + $0x8] sm:$0xff]  }
 0x607   : > { %v3373_v31 = vpop.f32.mrb[23].mxu0  ;;  %3401 = vmatmul.mubr.msk.bf16.vlgmr.msra.gmra.mrb[36].mxu1 %vm1660_vm7, %v2512_v36  ;;  %v3478_v36 = vld [vmem:[%s3717_s23] sm:$0xff]  }
 0x608   : > { %3411 = vmatpush3.bf16.msra.mxu1 %v2616_v43  ;;  %3412 = vmatprep.mubr.msk.bf16.mxu1 %vm3579_vm2, %v3578_v17 }
 0x609   : > { %3422 = vmatprep.subr.bf16.mxu1 %v3578_v17 }
 0x60a   : > { %v2458_v32 = vpop.f32.mrb[32].mxu1 }
 0x60b   : > { %v3390_v33 = vpop.f32.mrb[33].mxu1 }
 0x60c   : > { %v2412_v30 = vpop.f32.mrb[24].mxu0  ;;  %v2461_v29 = vpop.f32.mrb[34].mxu1 }
 0x60d   : > { %v2609_v40 = vpack.c.bf16 %v2412_v30, %v2366_v27  ;;  %v3384_v41 = vpop.f32.mrb[25].mxu0  ;;  %v3391_v48 = vpop.f32.mrb[35].mxu1 }
 0x60e   : > { %v2415_v34 = vpop.f32.mrb[26].mxu0 }
 0x60f   : > { %v3385_v60 = vpop.f32.mrb[27].mxu0  ;;  %3413 = vmatmul.mubr.msk.bf16.vlgmr.msra.gmra.mrb[40].mxu1 %vm1660_vm7, %v2609_v40 }
 0x610   : > { %3426 = vmatprep.mubr.msk.bf16.mxu1 %vm3579_vm2, %v3578_v17  ;;  %3423 = vmatpush3.bf16.msra.mxu1 %v3476_v39 }
 0x611   : > { %3424 = vmatprep.subr.bf16.mxu1 %v3578_v17 }
 0x614   : > { %v2504_v45 = vpop.f32.mrb[28].mxu0  ;;  %3425 = vmatpush3.bf16.msra.mxu1 %v3477_v35 }
 0x615   : > { %v2661_v28 = vpack.c.bf16 %v2504_v45, %v2458_v32  ;;  %v3396_v52 = vpop.f32.mrb[29].mxu0 }
 0x616   : > { %v2507_v22 = vpop.f32.mrb[30].mxu0 }
 0x617   : > { %v3397_v46 = vpop.f32.mrb[31].mxu0  ;;  %3419 = vmatmul.mubr.msk.bf16.vlgmr.msra.gmra.mrb[36].mxu0 %vm1660_vm7, %v2661_v28 }
 0x618   : > { %3438 = vmatprep.mubr.msk.bf16.mxu0 %vm3579_vm2, %v3578_v17  ;;  %3431 = vmatpush3.bf16.msra.mxu0 %v3478_v36  ;;  %v3220_v46 = vld [vmem:[%s3727_s14 + $0x1] ss:$0 sm:$0xff] }
 0x619   : > { %3432 = vmatprep.subr.bf16.mxu0 %v3578_v17 }
 0x61c   : > { %3433 = vmatpush3.bf16.msra.mxu0 %v3479_v19 }
 0x61d   : > { %3434 = vmatprep.subr.bf16.mxu0 %v3578_v17 }
 0x6b1   : > { %v2602_v42 = vpop.f32.mrb[32].mxu0 }
 0x6b2   : > { %v3408_v8 = vpop.f32.mrb[33].mxu0 }
 0x6b3   : > { %v2605_v51 = vpop.f32.mrb[34].mxu0 }
 0x6b4   : > { %v3409_v54 = vpop.f32.mrb[35].mxu0 }
 0x6da   : > { %v2555_v56 = vpop.f32.mrb[36].mxu1 }
 0x6db   : > { %v2603_v57 = vadd.f32 %v2602_v42, %v2555_v56  ;;  %v3402_v58 = vpop.f32.mrb[37].mxu1  ;;  %v3221_v56 = vld [vmem:[%s3732_s17 + $0x1] ss:$0 sm:$0xff] }
 0x6dc   : > { %v2558_v59 = vpop.f32.mrb[38].mxu1 }
 0x6dd   : > { %v2606_v47 = vadd.f32 %v2605_v51, %v2558_v59  ;;  %v3403_v50 = vpop.f32.mrb[39].mxu1 }
 0x6de   : > { %v3480_v50 = vld [vmem:[%s3717_s23 + $0x10] sm:$0xff]  }
 0x6df   : > { %3435 = vmatpush3.bf16.msra.mxu0 %v3480_v50 }
 0x6e0   : > { %3436 = vmatprep.subr.bf16.mxu0 %v3578_v17  ;;  %v3231_v17 = vld [vmem:[%s595_s26] ss:$0 sm:$0xff]  ;;  %s4281_s26 = sld [smem:[#allocation9_spill]] (!%p3232_p5) }
 0x6e2   : > { %v2652_v62 = vpop.f32.mrb[40].mxu1 }
 0x6e3   : > { %v2659_v63 = vadd.f32 %v2652_v62, %v2603_v57  ;;  %v3414_v0 = vpop.f32.mrb[41].mxu1  ;;  %v3481_v62 = vld [vmem:[%s3717_s23 + $0x18] sm:$0xff]  }
 0x6e4   : > { %v2655_v2 = vpop.f32.mrb[42].mxu1  ;;  %3437 = vmatpush3.bf16.msra.mxu0 %v3481_v62 }
 0x6e5   : > { %v2660_v3 = vadd.f32 %v2655_v2, %v2606_v47  ;;  %v3415_v53 = vpop.f32.mrb[43].mxu1 }
 0x6ea   : > { %v2704_v4 = vpop.f32.mrb[36].mxu0 }
 0x6eb   : > { %v2711_v49 = vadd.f32 %v2704_v4, %v2659_v63  ;;  %v3420_v5 = vpop.f32.mrb[37].mxu0  ;;  %v3222_v63 = vld [vmem:[%s587_s20] ss:$0 sm:$0xff] }
 0x6ec   : > { %v2707_v7 = vpop.f32.mrb[38].mxu0 }
 0x6ed   : > { %v2713_v10 = vadd.f32 %v3530_v9, %v2711_v49  ;;  %v2712_v55 = vadd.f32 %v2707_v7, %v2660_v3  ;;  %v3421_v26 = vpop.f32.mrb[39].mxu0 }
 0x6ef   : > { %v4176_v11 = vadd.f32 %v3217_v6, %v2713_v10  ;;  %v2714_v13 = vadd.f32 %v3531_v12, %v2712_v55 }
 0x6f1   : > { %v4178_v14 = vadd.f32 %v3217_v6, %v2714_v13  ;;  %v2728_v18 = vsel %vm626_vm1, %v4176_v11, 0.0 }
 0x6f2   : > { %2729 = vadd.xlane.f32.xlu0 %v2728_v18 }
 0x6f3   : > { %v2731_v1 = vsel %vm626_vm1, %v4178_v14, 0.0 }
 0x6f4   : > { %2732 = vadd.xlane.f32.xlu1 %v2731_v1 }
 0x77f   : > { %v2730_v20 = vpop.xlane.xlu0 %2729 }
 0x780   : > { %v2734_v15 = vmul.f32 0.03125, %v2730_v20 }
 0x781   : > { %v2733_v21 = vpop.xlane.xlu1 %2732 }
 0x782   : > { %v2736_v23 = vsub.f32 %v4176_v11, %v2734_v15  ;;  %v2735_v61 = vmul.f32 0.03125, %v2733_v21 }
 0x784   : > { %v2737_v24 = vsub.f32 %v4178_v14, %v2735_v61  ;;  %v2738_v25 = vmul.f32 %v2736_v23, %v2736_v23 }
 0x786   : > { %v2740_v27 = vsel %vm626_vm1, %v2738_v25, 0.0  ;;  %v2739_v38 = vmul.f32 %v2737_v24, %v2737_v24 }
 0x787   : > { %2741 = vadd.xlane.f32.xlu0 %v2740_v27 }
 0x788   : > { %v2743_v16 = vsel %vm626_vm1, %v2739_v38, 0.0 }
 0x789   : > { %2744 = vadd.xlane.f32.xlu1 %v2743_v16 }
 0x814   : > { %v2742_v37 = vpop.xlane.xlu0 %2741 }
 0x815   : > { %v2746_v43 = vmul.f32 0.032258064, %v2742_v37 }
 0x816   : > { %v2745_v44 = vpop.xlane.xlu1 %2744 }
 0x817   : > { %3522 = vrsqrt.f32 %v2746_v43  ;;  %v2747_v31 = vmul.f32 0.032258064, %v2745_v44  ;;  %vm2750_vm9 = vcmp.eq.f32.partialorder %v2746_v43, inf  ;;  %v2753_v30 = vand.u32 2147483648, %v2746_v43 }
 0x818   : > { %vm2752_vm10 = vcmp.eq.f32.partialorder %v2746_v43, 0.0 }
 0x819   : > { %3524 = vrsqrt.f32 %v2747_v31  ;;  %vm2757_vm11 = vcmp.eq.f32.partialorder %v2747_v31, inf  ;;  %v2760_v60 = vand.u32 2147483648, %v2747_v31  ;;  %vm2759_vm12 = vcmp.eq.f32.partialorder %v2747_v31, 0.0 }
 0x821   : > { %v3523_v32 = vpop.eup %3522 }
 0x822   : > { %v2749_v33 = vmul.f32 %v3523_v32, %v2746_v43 }
 0x823   : > { %v3525_v29 = vpop.eup %3524 }
 0x824   : > { %v2751_v40 = vsel %vm2750_vm9, %v2746_v43, %v2749_v33  ;;  %v2756_v48 = vmul.f32 %v3525_v29, %v2747_v31 }
 0x825   : > { %v2754_v41 = vsel %vm2752_vm10, %v2753_v30, %v2751_v40 }
 0x826   : > { %v2762_v34 = vadd.f32 1e-06, %v2754_v41  ;;  %v2758_v45 = vsel %vm2757_vm11, %v2747_v31, %v2756_v48 }
 0x827   : > { %v2761_v28 = vsel %vm2759_vm12, %v2760_v60, %v2758_v45  ;;  %v3233_v45 = vld [vmem:[%s4281_s26] ss:$0 sm:$0xff] (!%p3232_p5) }
 0x828   : > { %3526 = vrcp.f32 %v2762_v34  ;;  %v2763_v52 = vadd.f32 1e-06, %v2761_v28 }
 0x82a   : > { %3528 = vrcp.f32 %v2763_v52  ;;  %v3234_v52 = vld [vmem:[%s4282_s4] ss:$0 sm:$0xff] (!%p3232_p5) }
 0x832   : > { %v3527_v22 = vpop.eup %3526 }
 0x833   : > { %v2765_v42 = vmul.f32 %v3527_v22, %v2736_v23 }
 0x834   : > { %v3529_v8 = vpop.eup %3528 }
 0x835   : > { %v2767_v51 = vmul.f32 %v3529_v8, %v2737_v24  ;;  %v2774_v54 = vmul.f32 %v3220_v46, %v2765_v42 }
 0x837   : > { %v2775_v57 = vmul.f32 %v3220_v46, %v2767_v51  ;;  %v2782_v58 = vadd.f32 %v3221_v56, %v2774_v54 }
 0x839   : > { %v2783_v59 = vadd.f32 %v3221_v56, %v2775_v57 }
 0x83b   : > { %v2784_v47 = vpack.c.bf16 %v2783_v59, %v2782_v58 }
 0x83d   : > { %3427 = vmatmul.mubr.msk.bf16.vlgmr.msra.gmra.mrb[44].mxu1 %vm626_vm1, %v2784_v47 }
 0x910   : > { %v2845_v0 = vpop.f32.mrb[44].mxu1 }
 0x911   : > { %v2846_v2 = vadd.f32 %v3222_v63, %v2845_v0  ;;  %v3428_v3 = vpop.f32.mrb[45].mxu1 }
 0x912   : > { %v2848_v53 = vpop.f32.mrb[46].mxu1 }
 0x913   : > { %v2849_v4 = vadd.f32 %v3222_v63, %v2848_v53  ;;  %v3429_v49 = vpop.f32.mrb[47].mxu1  ;;  %v2852_v5 = vmax.f32 %v2846_v2, 0.0 }
 0x915   : > { %v2853_v6 = vmax.f32 %v2849_v4, 0.0 }
 0x917   : > { %v2854_v7 = vpack.c.bf16 %v2853_v6, %v2852_v5 }
 0x919   : > { %3439 = vmatmul.mubr.msk.bf16.vlgmr.msra.gmra.mrb[40].mxu0 %vm2887_vm13, %v2854_v7 }
 0x9ec   : > { %v2925_v9 = vpop.f32.mrb[40].mxu0 }
 0x9ed   : > { %v2932_v10 = vadd.f32 %v2925_v9, %v4176_v11  ;;  %v3440_v55 = vpop.f32.mrb[41].mxu0  ;;  %2948 = sbr.rel (%p3232_p5) target bundleno = 2878 (0xb3e), region = 84 }
 0x9ee   : > { %v2928_v26 = vpop.f32.mrb[42].mxu0 }
 0x9ef   : > { %v2941_v12 = vadd.f32 %v3231_v17, %v2932_v10  ;;  %v2933_v13 = vadd.f32 %v2928_v26, %v4178_v14  ;;  %v3441_v18 = vpop.f32.mrb[43].mxu0 }
 0x9f1   : > { %2943 = vst.msk [vmem:[#allocation2] sm:$0xff] %vm626_vm1, %v2941_v12  ;;  %v2942_v1 = vadd.f32 %v3231_v17, %v2933_v13  ;;  %v2951_v20 = vsel (!%p3232_p5), %vm626_vm1, %v2941_v12, 0.0 }
 0x9f2   : > { %2952 = vadd.xlane.f32.xlu0 (!%p3232_p5), %v2951_v20 }
 0x9f3   : > { %2944 = vst.msk [vmem:[#allocation2 + $0x8] sm:$0xff] %vm626_vm1, %v2942_v1  ;;  %v2954_v15 = vsel (!%p3232_p5), %vm626_vm1, %v2942_v1, 0.0 }
 0x9f6   : > { %2955 = vadd.xlane.f32.xlu0 %v2954_v15 }
 0xa7f   : > { %v2953_v11 = vpop.xlane.xlu0 %2952 }
 0xa80   : > { %v2957_v21 = vmul.f32 0.03125, %v2953_v11 }
 0xa82   : > { %v2959_v23 = vsub.f32 %v2941_v12, %v2957_v21 }
 0xa83   : > { %v2956_v61 = vpop.xlane.xlu0 %2955 }
 0xa84   : > { %v2958_v14 = vmul.f32 0.03125, %v2956_v61  ;;  %v2961_v24 = vmul.f32 %v2959_v23, %v2959_v23 }
 0xa86   : > { %v2960_v25 = vsub.f32 %v2942_v1, %v2958_v14  ;;  %v2963_v27 = vsel %vm626_vm1, %v2961_v24, 0.0 }
 0xa87   : > { %2964 = vadd.xlane.f32.xlu1 %v2963_v27 }
 0xa88   : > { %v2962_v38 = vmul.f32 %v2960_v25, %v2960_v25 }
 0xa8a   : > { %v2966_v16 = vsel %vm626_vm1, %v2962_v38, 0.0 }
 0xa8b   : > { %2967 = vadd.xlane.f32.xlu1 %v2966_v16 }
 0xb14   : > { %v2965_v39 = vpop.xlane.xlu1 %2964 }
 0xb15   : > { %v2969_v35 = vmul.f32 0.032258064, %v2965_v39 }
 0xb17   : > { %3532 = vrsqrt.f32 %v2969_v35  ;;  %vm2973_vm14 = vcmp.eq.f32.partialorder %v2969_v35, inf  ;;  %v2976_v44 = vand.u32 2147483648, %v2969_v35  ;;  %vm2975_vm15 = vcmp.eq.f32.partialorder %v2969_v35, 0.0 }
 0xb18   : > { %v2968_v36 = vpop.xlane.xlu1 %2967 }
 0xb19   : > { %v2970_v19 = vmul.f32 0.032258064, %v2968_v36 }
 0xb1b   : > { %3534 = vrsqrt.f32 %v2970_v19  ;;  %vm2980_vm0 = vcmp.eq.f32.partialorder %v2970_v19, inf  ;;  %v2983_v40 = vand.u32 2147483648, %v2970_v19  ;;  %vm2982_vm2 = vcmp.eq.f32.partialorder %v2970_v19, 0.0 }
 0xb21   : > { %v3533_v37 = vpop.eup %3532 }
 0xb22   : > { %v2972_v43 = vmul.f32 %v3533_v37, %v2969_v35 }
 0xb24   : > { %v2974_v31 = vsel %vm2973_vm14, %v2969_v35, %v2972_v43 }
 0xb25   : > { %v3535_v32 = vpop.eup %3534  ;;  %v2977_v33 = vsel %vm2975_vm15, %v2976_v44, %v2974_v31 }
 0xb26   : > { %v2985_v30 = vadd.f32 1e-06, %v2977_v33  ;;  %v2979_v29 = vmul.f32 %v3535_v32, %v2970_v19 }
 0xb28   : > { %3536 = vrcp.f32 %v2985_v30  ;;  %v2981_v41 = vsel %vm2980_vm0, %v2970_v19, %v2979_v29 }
 0xb29   : > { %v2984_v48 = vsel %vm2982_vm2, %v2983_v40, %v2981_v41 }
 0xb2a   : > { %v2986_v34 = vadd.f32 1e-06, %v2984_v48 }
 0xb2c   : > { %3538 = vrcp.f32 %v2986_v34 }
 0xb32   : > { %v3537_v60 = vpop.eup %3536 }
 0xb33   : > { %v2988_v28 = vmul.f32 %v3537_v60, %v2959_v23 }
 0xb35   : > { %v2997_v22 = vmul.f32 %v3233_v45, %v2988_v28 }
 0xb36   : > { %v3539_v46 = vpop.eup %3538 }
 0xb37   : > { %v3005_v42 = vadd.f32 %v3234_v52, %v2997_v22  ;;  %v2990_v8 = vmul.f32 %v3539_v46, %v2960_v25 }
 0xb39   : > { %3007 = vst.msk [vmem:[#allocation3] sm:$0xff] %vm626_vm1, %v3005_v42  ;;  %v2998_v51 = vmul.f32 %v3233_v45, %v2990_v8 }
 0xb3b   : > { %v3006_v54 = vadd.f32 %v3234_v52, %v2998_v51 }
 0xb3d   : > { %3008 = vst.msk [vmem:[#allocation3 + $0x8] sm:$0xff] %vm626_vm1, %v3006_v54 }
 0xb3e PF: > { %p3446_p6 = scmp.eq.s32.totalorder %s3677_s30, 1  ;;  %s3593_s18 = smov [#allocation3]  }
 0xb3f   : > { %s3015_s12 = sshll.u32 %s3593_s18, 4  ;;  %s3016_s12 = int_to_ptr.vmem [resolvable:$true] %s3015_s12 }
 0xb40   : > { %s3540_s22 = scalar_lea.vmem %s3016_s12, 256  ;;  %p3547_p10 = scmp.lt.s32.totalorder %s3016_s12, %s3016_s12 }
 0xb41   : > { %p3541_p7 = scmp.ne.s32.totalorder %s3016_s12, %s3540_s22  ;;  %p3548_p11 = scmp.lt.s32.totalorder %s3540_s22, %s3540_s22 }
 0xb43   : > { %p3542_p8 = pnand %p3541_p7, %p3446_p6  ;;  %p3549_p12 = por %p3548_p11, %p3547_p10 }
 0xb45   : > { %p3543_p9 = pneg %p3542_p8 }
 0xb47   : > { %p3550_p13 = pnand %p3549_p12, %p3543_p9 }
 0xb49   : > { %3553 = shalt.err (!%p3550_p13)
}
 0xb4a   : > { %s4283_s24 = sld [smem:[#allocation11_spill]] }
 0xb50   : > { %s3554_s27 = scalar_lea.hbm %s4283_s24, 256 }
 0xb51   : > { %p3555_p0 = scmp.ne.s32.totalorder %s4283_s24, %s3554_s27  ;;  %p3560_p3 = scmp.lt.u32.totalorder %s3554_s27, %s4283_s24 }
 0xb53   : > { %p3556_p1 = pnand %p3555_p0, %p3446_p6 }
 0xb55   : > { %p3557_p2 = pneg %p3556_p1 }
 0xb57   : > { %p3562_p4 = pnand %p3560_p3, %p3557_p2 }
 0xb59   : > { %3565 = shalt.err (!%p3562_p4)
}
 0xb5a   : > { %s3594_s14 = smov 128   ;;  %s3595_s23 = smov 8  }
 0xb5b   : > { %3443 = dma.vmem_to_hbm [thread:$0]  (%p3446_p6), %s3016_s12, 256, %s4283_s24, [#allocation4], %s3594_s14, %s3594_s14, %s3595_s23  }
 0xb5c   : > { %3571 = dma.done.wait (%p3446_p6), [#allocation4], 256  }
 0xb5d   : > { %3573 = vsyncadd (%p3446_p6), [#allocation4], 4294967040 }
 0xb5e PF: > { %s4284_s20 = sld [smem:[#allocation6_spill]] }
 0xb64   : > { %s25_s29 = sadd.s32 1, %s4284_s20  }
 0xb65   : > { %p22_p5 = scmp.ge.s32.totalorder %s25_s29, 4  }
 0xb67   :  { %24 = sbr.rel (!%p22_p5) target bundleno = 7 (0x7), region = 143 }
 0xb6e   :  { %3031 = vsyncpa [#allocation4], 1 }
 0xb6f   :  { %3033 = vsyncpa [#allocation4 + $0x1], 1 }

</bundles_post_ra>
